<compile_context>
chip_gen: v6e
topology: v6e:2x2x1
jax: 0.10.0
libtpu: 0.0.40
codegen_flags: <defaults>
</compile_context>

<pallas_src>
import functools
import math

import jax
import jax.numpy as jnp
from jax.experimental import pallas as pl
from jax.experimental.pallas import tpu as pltpu


# ----------------------------- Pallas kernel -------------------------------

def _fused_adapter_encoder_kernel(
        asr_ref, lin_w_ref, lin_b_ref, pos_ref, keep_ref, bias_ref,
        wqkv_ref, bqkv_ref, wo_ref, bo_ref,
        ln1_g_ref, ln1_b_ref,
        w1_ref, b1_ref, w2_ref, b2_ref,
        ln2_g_ref, ln2_b_ref,
        o_ref, x_scr,
        *, num_heads, head_dim, emb_scale):
    """One grid step = (one batch element, one encoder layer)."""
    D = num_heads * head_dim
    scale = head_dim ** -0.5
    eps = 1e-5
    layer = pl.program_id(1)

    # ---- layer 0: adapter Linear + embed_scale + positional emb + pad mask ----
    @pl.when(layer == 0)
    def _():
        e = jnp.dot(asr_ref[...], lin_w_ref[...],
                    preferred_element_type=jnp.float32) + lin_b_ref[...]
        x_scr[...] = (e * emb_scale + pos_ref[...]) * keep_ref[...]

    residual = x_scr[...]                              # (T, D) f32, carried across layers
    x = residual.astype(jnp.bfloat16)
    bias = bias_ref[...]                               # (1, T) f32, -1e30 at padded keys

    # fused QKV projection: (T, D) @ (D, 3D)
    qkv = jnp.dot(x, wqkv_ref[...], preferred_element_type=jnp.float32) + bqkv_ref[...]

    # attention + output projection, accumulated per head; residual and out-proj
    # bias folded into the accumulator.
    acc = residual + bo_ref[...]
    for h in range(num_heads):
        q = qkv[:, h * head_dim:(h + 1) * head_dim] * scale            # (T, Dh)
        k = qkv[:, D + h * head_dim:D + (h + 1) * head_dim]            # (T, Dh)
        v = qkv[:, 2 * D + h * head_dim:2 * D + (h + 1) * head_dim]    # (T, Dh)

        s = jax.lax.dot_general(q.astype(jnp.bfloat16), k.astype(jnp.bfloat16),
                                (((1,), (1,)), ((), ())),
                                preferred_element_type=jnp.float32)     # (T, T)
        s = s + bias                                                    # key padding
        m = jnp.max(s, axis=-1, keepdims=True)
        p = jnp.exp(s - m)
        denom = jnp.sum(p, axis=-1, keepdims=True)
        p = p * pl.reciprocal(denom, approx=True)
        o_h = jax.lax.dot_general(p.astype(jnp.bfloat16), v.astype(jnp.bfloat16),
                                  (((1,), (0,)), ((), ())),
                                  preferred_element_type=jnp.float32)   # (T, Dh)
        # per-head slice of the output projection weight (static, sublane-aligned start)
        acc = acc + jnp.dot(o_h.astype(jnp.bfloat16),
                            wo_ref[pl.ds(h * head_dim, head_dim), :],
                            preferred_element_type=jnp.float32)

    # post-norm LayerNorm #1 (f32 stats)
    mu = jnp.mean(acc, axis=-1, keepdims=True)
    var = jnp.mean((acc - mu) ** 2, axis=-1, keepdims=True)
    x1 = (acc - mu) * jax.lax.rsqrt(var + eps) * ln1_g_ref[...] + ln1_b_ref[...]

    # FFN: ReLU(x1 @ w1 + b1) @ w2 + b2, residual, LayerNorm #2
    f = jnp.dot(x1.astype(jnp.bfloat16), w1_ref[...],
                preferred_element_type=jnp.float32) + b1_ref[...]
    f = jnp.maximum(f, 0.0)
    f2 = jnp.dot(f.astype(jnp.bfloat16), w2_ref[...],
                 preferred_element_type=jnp.float32) + b2_ref[...]
    h2 = f2 + x1
    mu2 = jnp.mean(h2, axis=-1, keepdims=True)
    var2 = jnp.mean((h2 - mu2) ** 2, axis=-1, keepdims=True)
    x2 = (h2 - mu2) * jax.lax.rsqrt(var2 + eps) * ln2_g_ref[...] + ln2_b_ref[...]

    # carry for next layer; commit to the revisited output block on the last layer
    x_scr[...] = x2

    @pl.when(layer == pl.num_programs(1) - 1)
    def _():
        o_ref[...] = x2.astype(o_ref.dtype)


# ------------------------------- glue (JAX) ---------------------------------

def sinusoidal_positions(tokens, dim, padding_idx):
    """fairseq SinusoidalPositionalEmbedding + make_positions, returns (B, T, dim)."""
    B, T = tokens.shape
    nonpad = (tokens != padding_idx).astype(jnp.int32)
    positions = jnp.cumsum(nonpad, axis=1) * nonpad + padding_idx
    num_emb = padding_idx + T + 1
    half = dim // 2
    e = math.log(10000.0) / (half - 1)
    e = jnp.exp(jnp.arange(half, dtype=jnp.float32) * -e)
    e = jnp.arange(num_emb, dtype=jnp.float32)[:, None] * e[None, :]
    table = jnp.concatenate([jnp.sin(e), jnp.cos(e)], axis=1)
    if dim % 2 == 1:
        table = jnp.concatenate([table, jnp.zeros((num_emb, 1), jnp.float32)], axis=1)
    table = table.at[padding_idx].set(0.0)
    return table[positions]


def transformer_adapter_forward(params, asr_output, asr_tokens, pad):
    B, T, A = asr_output.shape
    D = params["lin_w"].shape[1]
    H = params["num_heads"]
    lw = params["layers"]
    L = lw["wqkv"].shape[0]
    F = lw["w1"].shape[-1]
    head_dim = D // H

    pad_mask = (asr_tokens == pad)                                        # (B, T) bool
    # lane-dense keep mask (zero out padded positions after embedding)
    keep = jnp.broadcast_to((~pad_mask).astype(jnp.float32)[:, :, None], (B, T, D))
    pos = sinusoidal_positions(asr_tokens, D, pad)                        # (B, T, D) f32
    # key-padding additive bias (large finite negative; broadcast inside kernel)
    bias = jnp.where(pad_mask, -1e30, 0.0).astype(jnp.float32)[:, None, :]  # (B, 1, T)

    def rep(shape):                       # replicated across the whole grid
        n = len(shape)
        return pl.BlockSpec(shape, lambda b, l, _n=n: (0,) * _n)

    def per_batch(shape):                 # indexed by batch, resident across layers
        n = len(shape)
        return pl.BlockSpec((None,) + shape, lambda b, l, _n=n: (b,) + (0,) * _n)

    def per_layer(shape):                 # indexed by layer (stacked weights)
        n = len(shape)
        return pl.BlockSpec((None,) + shape, lambda b, l, _n=n: (l,) + (0,) * _n)

    kernel = functools.partial(_fused_adapter_encoder_kernel,
                               num_heads=H, head_dim=head_dim,
                               emb_scale=math.sqrt(D))

    x = pl.pallas_call(
        kernel,
        out_shape=jax.ShapeDtypeStruct((B, T, D), jnp.bfloat16),
        grid=(B, L),
        in_specs=[
            per_batch((T, A)),                                # ASR output
            rep((A, D)), rep((1, D)),                         # adapter Linear w, b
            per_batch((T, D)), per_batch((T, D)),             # pos emb, keep mask
            per_batch((1, T)),                                # key-padding bias
            per_layer((D, 3 * D)), per_layer((1, 3 * D)),     # wqkv, bqkv
            per_layer((D, D)), per_layer((1, D)),             # wo, bo
            per_layer((1, D)), per_layer((1, D)),             # ln1 gamma/beta
            per_layer((D, F)), per_layer((1, F)),             # w1, b1
            per_layer((F, D)), per_layer((1, D)),             # w2, b2
            per_layer((1, D)), per_layer((1, D)),             # ln2 gamma/beta
        ],
        out_specs=per_batch((T, D)),
        scratch_shapes=[pltpu.VMEM((T, D), jnp.float32)],     # carried hidden state
        compiler_params=pltpu.CompilerParams(
            dimension_semantics=("parallel", "arbitrary")),
    )(asr_output.astype(jnp.bfloat16), params["lin_w"], params["lin_b"],
      pos, keep, bias,
      lw["wqkv"], lw["bqkv"], lw["wo"], lw["bo"],
      lw["ln1_g"], lw["ln1_b"],
      lw["w1"], lw["b1"], lw["w2"], lw["b2"],
      lw["ln2_g"], lw["ln2_b"])

    # default cfg is post-norm -> no final layer norm; return T x B x C in f32
    encoder_out = jnp.transpose(x, (1, 0, 2)).astype(jnp.float32)
    return encoder_out, pad_mask


def init_params(key, asr_dim, mt_dim, ffn_dim, num_layers, num_heads):
    keys = iter(jax.random.split(key, 2 + 4 * num_layers))

    def W(shape):
        return (0.02 * jax.random.normal(next(keys), shape, dtype=jnp.float32)
                ).astype(jnp.bfloat16)

    def stacked_W(shape):
        return W((num_layers,) + shape)

    def zeros(shape):
        return jnp.zeros(shape, jnp.float32)

    def ones(shape):
        return jnp.ones(shape, jnp.float32)

    params = {
        "num_heads": num_heads,
        "lin_w": W((asr_dim, mt_dim)),                      # (Din, Dout), bf16
        "lin_b": zeros((1, mt_dim)),
        "layers": {
            # per-layer weights stacked on a leading layer axis
            "wqkv": stacked_W((mt_dim, 3 * mt_dim)),        # [Wq | Wk | Wv] concatenated
            "bqkv": zeros((num_layers, 1, 3 * mt_dim)),
            "wo": stacked_W((mt_dim, mt_dim)),
            "bo": zeros((num_layers, 1, mt_dim)),
            "ln1_g": ones((num_layers, 1, mt_dim)),
            "ln1_b": zeros((num_layers, 1, mt_dim)),
            "w1": stacked_W((mt_dim, ffn_dim)),
            "b1": zeros((num_layers, 1, ffn_dim)),
            "w2": stacked_W((ffn_dim, mt_dim)),
            "b2": zeros((num_layers, 1, mt_dim)),
            "ln2_g": ones((num_layers, 1, mt_dim)),
            "ln2_b": zeros((num_layers, 1, mt_dim)),
        },
    }
    return params


if __name__ == "__main__":
    B, T = 2, 8
    ASR_DIM, MT_DIM, FFN_DIM = 48, 32, 64
    NUM_LAYERS, NUM_HEADS = 2, 2
    PAD = 1

    key = jax.random.PRNGKey(0)
    kp, kx, kt = jax.random.split(key, 3)
    params = init_params(kp, ASR_DIM, MT_DIM, FFN_DIM, NUM_LAYERS, NUM_HEADS)

    asr_output = jax.random.normal(kx, (B, T, ASR_DIM), dtype=jnp.float32)
    asr_tokens = jax.random.randint(kt, (B, T), 2, 30)
    asr_tokens = asr_tokens.at[1, T - 2:].set(PAD)   # some padding to exercise the mask

    out, pad_mask = transformer_adapter_forward(params, asr_output, asr_tokens, PAD)
    jax.block_until_ready(out)

    assert out.shape == (T, B, MT_DIM)
    assert bool(jnp.isfinite(out).all())
    print("KERNEL_OK")
</pallas_src>

<mosaic_0001>
module attributes {stable_mosaic.version = 11 : i64} {
  func.func @_fused_adapter_encoder_kernel(%arg0: i32, %arg1: i32, %arg2: memref<1x8x48xbf16, #tpu.memory_space<vmem>>, %arg3: memref<48x32xbf16, #tpu.memory_space<vmem>>, %arg4: memref<1x32xf32, #tpu.memory_space<vmem>>, %arg5: memref<1x8x32xf32, #tpu.memory_space<vmem>>, %arg6: memref<1x8x32xf32, #tpu.memory_space<vmem>>, %arg7: memref<1x1x8xf32, #tpu.memory_space<vmem>>, %arg8: memref<1x32x96xbf16, #tpu.memory_space<vmem>>, %arg9: memref<1x1x96xf32, #tpu.memory_space<vmem>>, %arg10: memref<1x32x32xbf16, #tpu.memory_space<vmem>>, %arg11: memref<1x1x32xf32, #tpu.memory_space<vmem>>, %arg12: memref<1x1x32xf32, #tpu.memory_space<vmem>>, %arg13: memref<1x1x32xf32, #tpu.memory_space<vmem>>, %arg14: memref<1x32x64xbf16, #tpu.memory_space<vmem>>, %arg15: memref<1x1x64xf32, #tpu.memory_space<vmem>>, %arg16: memref<1x64x32xbf16, #tpu.memory_space<vmem>>, %arg17: memref<1x1x32xf32, #tpu.memory_space<vmem>>, %arg18: memref<1x1x32xf32, #tpu.memory_space<vmem>>, %arg19: memref<1x1x32xf32, #tpu.memory_space<vmem>>, %arg20: memref<1x8x32xbf16, #tpu.memory_space<vmem>>, %arg21: memref<8x32xf32, #tpu.memory_space<vmem>>) attributes {dimension_semantics = [#tpu.dimension_semantics<parallel>, #tpu.dimension_semantics<arbitrary>], iteration_bounds = array<i64: 2, 2>, scalar_prefetch = 0 : i64, scratch_operands = 1 : i64, tpu.core_type = #tpu.core_type<tc>, window_params = [{transform_indices = @transform_0, window_bounds = array<i64: 1, 8, 48>}, {pipeline_mode = #tpu.pipeline_mode<synchronous>, transform_indices = @transform_1, window_bounds = array<i64: 48, 32>}, {pipeline_mode = #tpu.pipeline_mode<synchronous>, transform_indices = @transform_2, window_bounds = array<i64: 1, 32>}, {transform_indices = @transform_3, window_bounds = array<i64: 1, 8, 32>}, {transform_indices = @transform_4, window_bounds = array<i64: 1, 8, 32>}, {transform_indices = @transform_5, window_bounds = array<i64: 1, 1, 8>}, {transform_indices = @transform_6, window_bounds = array<i64: 1, 32, 96>}, {transform_indices = @transform_7, window_bounds = array<i64: 1, 1, 96>}, {transform_indices = @transform_8, window_bounds = array<i64: 1, 32, 32>}, {transform_indices = @transform_9, window_bounds = array<i64: 1, 1, 32>}, {transform_indices = @transform_10, window_bounds = array<i64: 1, 1, 32>}, {transform_indices = @transform_11, window_bounds = array<i64: 1, 1, 32>}, {transform_indices = @transform_12, window_bounds = array<i64: 1, 32, 64>}, {transform_indices = @transform_13, window_bounds = array<i64: 1, 1, 64>}, {transform_indices = @transform_14, window_bounds = array<i64: 1, 64, 32>}, {transform_indices = @transform_15, window_bounds = array<i64: 1, 1, 32>}, {transform_indices = @transform_16, window_bounds = array<i64: 1, 1, 32>}, {transform_indices = @transform_17, window_bounds = array<i64: 1, 1, 32>}, {transform_indices = @transform_18, window_bounds = array<i64: 1, 8, 32>}]} {
    %c0_i32 = arith.constant 0 : i32
    %0 = arith.cmpi eq, %arg1, %c0_i32 : i32
    %1 = arith.extui %0 : i1 to i32
    %c0_i32_0 = arith.constant 0 : i32
    %2 = arith.cmpi ne, %1, %c0_i32_0 : i32
    scf.if %2 {
      %c0_71 = arith.constant 0 : index
      %c0_72 = arith.constant 0 : index
      %c0_73 = arith.constant 0 : index
      %149 = vector.load %arg2[%c0_71, %c0_72, %c0_73] : memref<1x8x48xbf16, #tpu.memory_space<vmem>>, vector<1x8x48xbf16>
      %150 = vector.shape_cast %149 : vector<1x8x48xbf16> to vector<8x48xbf16>
      %c0_74 = arith.constant 0 : index
      %c0_75 = arith.constant 0 : index
      %151 = vector.load %arg3[%c0_74, %c0_75] : memref<48x32xbf16, #tpu.memory_space<vmem>>, vector<48x32xbf16>
      %cst_76 = arith.constant dense<0.000000e+00> : vector<8x32xf32>
      %152 = tpu.matmul %150, %151, %cst_76 {dimension_numbers = #tpu.dot_dimension_numbers<[1], [0], [0], [1], [0, 0, 1, 1], [], []>} : vector<8x48xbf16>, vector<48x32xbf16>, vector<8x32xf32> -> vector<8x32xf32>
      %c0_77 = arith.constant 0 : index
      %c0_78 = arith.constant 0 : index
      %153 = vector.load %arg4[%c0_77, %c0_78] : memref<1x32xf32, #tpu.memory_space<vmem>>, vector<1x32xf32>
      %154 = vector.broadcast %153 : vector<1x32xf32> to vector<8x32xf32>
      %155 = arith.addf %152, %154 : vector<8x32xf32>
      %cst_79 = arith.constant 5.65685415 : f32
      %156 = vector.broadcast %cst_79 : f32 to vector<8x32xf32>
      %157 = arith.mulf %155, %156 : vector<8x32xf32>
      %c0_80 = arith.constant 0 : index
      %c0_81 = arith.constant 0 : index
      %c0_82 = arith.constant 0 : index
      %158 = vector.load %arg5[%c0_80, %c0_81, %c0_82] : memref<1x8x32xf32, #tpu.memory_space<vmem>>, vector<1x8x32xf32>
      %159 = vector.shape_cast %158 : vector<1x8x32xf32> to vector<8x32xf32>
      %160 = arith.addf %157, %159 : vector<8x32xf32>
      %c0_83 = arith.constant 0 : index
      %c0_84 = arith.constant 0 : index
      %c0_85 = arith.constant 0 : index
      %161 = vector.load %arg6[%c0_83, %c0_84, %c0_85] : memref<1x8x32xf32, #tpu.memory_space<vmem>>, vector<1x8x32xf32>
      %162 = vector.shape_cast %161 : vector<1x8x32xf32> to vector<8x32xf32>
      %163 = arith.mulf %160, %162 : vector<8x32xf32>
      %c0_86 = arith.constant 0 : index
      %c0_87 = arith.constant 0 : index
      %164 = vector.load %arg21[%c0_86, %c0_87] : memref<8x32xf32, #tpu.memory_space<vmem>>, vector<8x32xf32>
      tpu.vector_store %arg21[%c0_86, %c0_87], %163 {strides = array<i32>} : memref<8x32xf32, #tpu.memory_space<vmem>>, vector<8x32xf32>,
    } else {
    }
    %c0 = arith.constant 0 : index
    %c0_1 = arith.constant 0 : index
    %3 = vector.load %arg21[%c0, %c0_1] : memref<8x32xf32, #tpu.memory_space<vmem>>, vector<8x32xf32>
    %4 = arith.truncf %3 : vector<8x32xf32> to vector<8x32xbf16>
    %c0_2 = arith.constant 0 : index
    %c0_3 = arith.constant 0 : index
    %c0_4 = arith.constant 0 : index
    %5 = vector.load %arg7[%c0_2, %c0_3, %c0_4] : memref<1x1x8xf32, #tpu.memory_space<vmem>>, vector<1x1x8xf32>
    %6 = vector.shape_cast %5 : vector<1x1x8xf32> to vector<1x8xf32>
    %c0_5 = arith.constant 0 : index
    %c0_6 = arith.constant 0 : index
    %c0_7 = arith.constant 0 : index
    %7 = vector.load %arg8[%c0_5, %c0_6, %c0_7] : memref<1x32x96xbf16, #tpu.memory_space<vmem>>, vector<1x32x96xbf16>
    %8 = vector.shape_cast %7 : vector<1x32x96xbf16> to vector<32x96xbf16>
    %cst = arith.constant dense<0.000000e+00> : vector<8x96xf32>
    %9 = tpu.matmul %4, %8, %cst {dimension_numbers = #tpu.dot_dimension_numbers<[1], [0], [0], [1], [0, 0, 1, 1], [], []>} : vector<8x32xbf16>, vector<32x96xbf16>, vector<8x96xf32> -> vector<8x96xf32>
    %c0_8 = arith.constant 0 : index
    %c0_9 = arith.constant 0 : index
    %c0_10 = arith.constant 0 : index
    %10 = vector.load %arg9[%c0_8, %c0_9, %c0_10] : memref<1x1x96xf32, #tpu.memory_space<vmem>>, vector<1x1x96xf32>
    %11 = vector.shape_cast %10 : vector<1x1x96xf32> to vector<1x96xf32>
    %12 = vector.broadcast %11 : vector<1x96xf32> to vector<8x96xf32>
    %13 = arith.addf %9, %12 : vector<8x96xf32>
    %c0_11 = arith.constant 0 : index
    %c0_12 = arith.constant 0 : index
    %c0_13 = arith.constant 0 : index
    %14 = vector.load %arg11[%c0_11, %c0_12, %c0_13] : memref<1x1x32xf32, #tpu.memory_space<vmem>>, vector<1x1x32xf32>
    %15 = vector.shape_cast %14 : vector<1x1x32xf32> to vector<1x32xf32>
    %16 = vector.broadcast %15 : vector<1x32xf32> to vector<8x32xf32>
    %17 = arith.addf %3, %16 : vector<8x32xf32>
    %18 = vector.extract_strided_slice %13 {offsets = [0, 0], sizes = [8, 16], strides = [1, 1]} : vector<8x96xf32> to vector<8x16xf32>
    %cst_14 = arith.constant 2.500000e-01 : f32
    %19 = vector.broadcast %cst_14 : f32 to vector<8x16xf32>
    %20 = arith.mulf %18, %19 : vector<8x16xf32>
    %21 = vector.extract_strided_slice %13 {offsets = [0, 32], sizes = [8, 16], strides = [1, 1]} : vector<8x96xf32> to vector<8x16xf32>
    %22 = vector.extract_strided_slice %13 {offsets = [0, 64], sizes = [8, 16], strides = [1, 1]} : vector<8x96xf32> to vector<8x16xf32>
    %23 = arith.truncf %20 : vector<8x16xf32> to vector<8x16xbf16>
    %24 = arith.truncf %21 : vector<8x16xf32> to vector<8x16xbf16>
    %cst_15 = arith.constant dense<0.000000e+00> : vector<8x8xf32>
    %25 = tpu.matmul %23, %24, %cst_15 {dimension_numbers = #tpu.dot_dimension_numbers<[1], [1], [0], [0], [0, 0, 1, 0], [], []>} : vector<8x16xbf16>, vector<8x16xbf16>, vector<8x8xf32> -> vector<8x8xf32>
    %26 = vector.broadcast %6 : vector<1x8xf32> to vector<8x8xf32>
    %27 = arith.addf %25, %26 : vector<8x8xf32>
    %cst_16 = arith.constant dense<0xFF800000> : vector<8xf32>
    %28 = vector.multi_reduction <maximumf>, %27, %cst_16 [1] : vector<8x8xf32> to vector<8xf32>
    %29 = vector.shape_cast %28 : vector<8xf32> to vector<8x1xf32>
    %30 = vector.broadcast %29 : vector<8x1xf32> to vector<8x8xf32>
    %31 = arith.subf %27, %30 : vector<8x8xf32>
    %32 = math.exp %31 : vector<8x8xf32>
    %cst_17 = arith.constant dense<0.000000e+00> : vector<8xf32>
    %33 = vector.multi_reduction <add>, %32, %cst_17 [1] : vector<8x8xf32> to vector<8xf32>
    %34 = vector.shape_cast %33 : vector<8xf32> to vector<8x1xf32>
    %35 = tpu.reciprocal %34 {approx = true} : vector<8x1xf32> -> vector<8x1xf32>
    %36 = vector.broadcast %35 : vector<8x1xf32> to vector<8x8xf32>
    %37 = arith.mulf %32, %36 : vector<8x8xf32>
    %38 = arith.truncf %37 : vector<8x8xf32> to vector<8x8xbf16>
    %39 = arith.truncf %22 : vector<8x16xf32> to vector<8x16xbf16>
    %cst_18 = arith.constant dense<0.000000e+00> : vector<8x16xf32>
    %40 = tpu.matmul %38, %39, %cst_18 {dimension_numbers = #tpu.dot_dimension_numbers<[1], [0], [0], [1], [0, 0, 1, 1], [], []>} : vector<8x8xbf16>, vector<8x16xbf16>, vector<8x16xf32> -> vector<8x16xf32>
    %41 = arith.truncf %40 : vector<8x16xf32> to vector<8x16xbf16>
    %c0_19 = arith.constant 0 : index
    %c0_20 = arith.constant 0 : index
    %c0_21 = arith.constant 0 : index
    %42 = vector.load %arg10[%c0_19, %c0_20, %c0_21] : memref<1x32x32xbf16, #tpu.memory_space<vmem>>, vector<1x16x32xbf16>
    %43 = vector.shape_cast %42 : vector<1x16x32xbf16> to vector<16x32xbf16>
    %cst_22 = arith.constant dense<0.000000e+00> : vector<8x32xf32>
    %44 = tpu.matmul %41, %43, %cst_22 {dimension_numbers = #tpu.dot_dimension_numbers<[1], [0], [0], [1], [0, 0, 1, 1], [], []>} : vector<8x16xbf16>, vector<16x32xbf16>, vector<8x32xf32> -> vector<8x32xf32>
    %45 = arith.addf %17, %44 : vector<8x32xf32>
    %46 = vector.extract_strided_slice %13 {offsets = [0, 16], sizes = [8, 16], strides = [1, 1]} : vector<8x96xf32> to vector<8x16xf32>
    %cst_23 = arith.constant 2.500000e-01 : f32
    %47 = vector.broadcast %cst_23 : f32 to vector<8x16xf32>
    %48 = arith.mulf %46, %47 : vector<8x16xf32>
    %49 = vector.extract_strided_slice %13 {offsets = [0, 48], sizes = [8, 16], strides = [1, 1]} : vector<8x96xf32> to vector<8x16xf32>
    %50 = vector.extract_strided_slice %13 {offsets = [0, 80], sizes = [8, 16], strides = [1, 1]} : vector<8x96xf32> to vector<8x16xf32>
    %51 = arith.truncf %48 : vector<8x16xf32> to vector<8x16xbf16>
    %52 = arith.truncf %49 : vector<8x16xf32> to vector<8x16xbf16>
    %cst_24 = arith.constant dense<0.000000e+00> : vector<8x8xf32>
    %53 = tpu.matmul %51, %52, %cst_24 {dimension_numbers = #tpu.dot_dimension_numbers<[1], [1], [0], [0], [0, 0, 1, 0], [], []>} : vector<8x16xbf16>, vector<8x16xbf16>, vector<8x8xf32> -> vector<8x8xf32>
    %54 = vector.broadcast %6 : vector<1x8xf32> to vector<8x8xf32>
    %55 = arith.addf %53, %54 : vector<8x8xf32>
    %cst_25 = arith.constant dense<0xFF800000> : vector<8xf32>
    %56 = vector.multi_reduction <maximumf>, %55, %cst_25 [1] : vector<8x8xf32> to vector<8xf32>
    %57 = vector.shape_cast %56 : vector<8xf32> to vector<8x1xf32>
    %58 = vector.broadcast %57 : vector<8x1xf32> to vector<8x8xf32>
    %59 = arith.subf %55, %58 : vector<8x8xf32>
    %60 = math.exp %59 : vector<8x8xf32>
    %cst_26 = arith.constant dense<0.000000e+00> : vector<8xf32>
    %61 = vector.multi_reduction <add>, %60, %cst_26 [1] : vector<8x8xf32> to vector<8xf32>
    %62 = vector.shape_cast %61 : vector<8xf32> to vector<8x1xf32>
    %63 = tpu.reciprocal %62 {approx = true} : vector<8x1xf32> -> vector<8x1xf32>
    %64 = vector.broadcast %63 : vector<8x1xf32> to vector<8x8xf32>
    %65 = arith.mulf %60, %64 : vector<8x8xf32>
    %66 = arith.truncf %65 : vector<8x8xf32> to vector<8x8xbf16>
    %67 = arith.truncf %50 : vector<8x16xf32> to vector<8x16xbf16>
    %cst_27 = arith.constant dense<0.000000e+00> : vector<8x16xf32>
    %68 = tpu.matmul %66, %67, %cst_27 {dimension_numbers = #tpu.dot_dimension_numbers<[1], [0], [0], [1], [0, 0, 1, 1], [], []>} : vector<8x8xbf16>, vector<8x16xbf16>, vector<8x16xf32> -> vector<8x16xf32>
    %69 = arith.truncf %68 : vector<8x16xf32> to vector<8x16xbf16>
    %c0_28 = arith.constant 0 : index
    %c16 = arith.constant 16 : index
    %c0_29 = arith.constant 0 : index
    %70 = vector.load %arg10[%c0_28, %c16, %c0_29] : memref<1x32x32xbf16, #tpu.memory_space<vmem>>, vector<1x16x32xbf16>
    %71 = vector.shape_cast %70 : vector<1x16x32xbf16> to vector<16x32xbf16>
    %cst_30 = arith.constant dense<0.000000e+00> : vector<8x32xf32>
    %72 = tpu.matmul %69, %71, %cst_30 {dimension_numbers = #tpu.dot_dimension_numbers<[1], [0], [0], [1], [0, 0, 1, 1], [], []>} : vector<8x16xbf16>, vector<16x32xbf16>, vector<8x32xf32> -> vector<8x32xf32>
    %73 = arith.addf %45, %72 : vector<8x32xf32>
    %cst_31 = arith.constant dense<0.000000e+00> : vector<8xf32>
    %74 = vector.multi_reduction <add>, %73, %cst_31 [1] : vector<8x32xf32> to vector<8xf32>
    %75 = vector.shape_cast %74 : vector<8xf32> to vector<8x1xf32>
    %cst_32 = arith.constant 3.200000e+01 : f32
    %76 = vector.broadcast %cst_32 : f32 to vector<8x1xf32>
    %77 = arith.divf %75, %76 : vector<8x1xf32>
    %78 = vector.broadcast %77 : vector<8x1xf32> to vector<8x32xf32>
    %79 = arith.subf %73, %78 : vector<8x32xf32>
    %80 = arith.mulf %79, %79 : vector<8x32xf32>
    %cst_33 = arith.constant dense<0.000000e+00> : vector<8xf32>
    %81 = vector.multi_reduction <add>, %80, %cst_33 [1] : vector<8x32xf32> to vector<8xf32>
    %82 = vector.shape_cast %81 : vector<8xf32> to vector<8x1xf32>
    %cst_34 = arith.constant 3.200000e+01 : f32
    %83 = vector.broadcast %cst_34 : f32 to vector<8x1xf32>
    %84 = arith.divf %82, %83 : vector<8x1xf32>
    %85 = vector.broadcast %77 : vector<8x1xf32> to vector<8x32xf32>
    %86 = arith.subf %73, %85 : vector<8x32xf32>
    %cst_35 = arith.constant 9.99999974E-6 : f32
    %87 = vector.broadcast %cst_35 : f32 to vector<8x1xf32>
    %88 = arith.addf %84, %87 : vector<8x1xf32>
    %89 = math.rsqrt %88 : vector<8x1xf32>
    %90 = vector.broadcast %89 : vector<8x1xf32> to vector<8x32xf32>
    %91 = arith.mulf %86, %90 : vector<8x32xf32>
    %c0_36 = arith.constant 0 : index
    %c0_37 = arith.constant 0 : index
    %c0_38 = arith.constant 0 : index
    %92 = vector.load %arg12[%c0_36, %c0_37, %c0_38] : memref<1x1x32xf32, #tpu.memory_space<vmem>>, vector<1x1x32xf32>
    %93 = vector.shape_cast %92 : vector<1x1x32xf32> to vector<1x32xf32>
    %94 = vector.broadcast %93 : vector<1x32xf32> to vector<8x32xf32>
    %95 = arith.mulf %91, %94 : vector<8x32xf32>
    %c0_39 = arith.constant 0 : index
    %c0_40 = arith.constant 0 : index
    %c0_41 = arith.constant 0 : index
    %96 = vector.load %arg13[%c0_39, %c0_40, %c0_41] : memref<1x1x32xf32, #tpu.memory_space<vmem>>, vector<1x1x32xf32>
    %97 = vector.shape_cast %96 : vector<1x1x32xf32> to vector<1x32xf32>
    %98 = vector.broadcast %97 : vector<1x32xf32> to vector<8x32xf32>
    %99 = arith.addf %95, %98 : vector<8x32xf32>
    %100 = arith.truncf %99 : vector<8x32xf32> to vector<8x32xbf16>
    %c0_42 = arith.constant 0 : index
    %c0_43 = arith.constant 0 : index
    %c0_44 = arith.constant 0 : index
    %101 = vector.load %arg14[%c0_42, %c0_43, %c0_44] : memref<1x32x64xbf16, #tpu.memory_space<vmem>>, vector<1x32x64xbf16>
    %102 = vector.shape_cast %101 : vector<1x32x64xbf16> to vector<32x64xbf16>
    %cst_45 = arith.constant dense<0.000000e+00> : vector<8x64xf32>
    %103 = tpu.matmul %100, %102, %cst_45 {dimension_numbers = #tpu.dot_dimension_numbers<[1], [0], [0], [1], [0, 0, 1, 1], [], []>} : vector<8x32xbf16>, vector<32x64xbf16>, vector<8x64xf32> -> vector<8x64xf32>
    %c0_46 = arith.constant 0 : index
    %c0_47 = arith.constant 0 : index
    %c0_48 = arith.constant 0 : index
    %104 = vector.load %arg15[%c0_46, %c0_47, %c0_48] : memref<1x1x64xf32, #tpu.memory_space<vmem>>, vector<1x1x64xf32>
    %105 = vector.shape_cast %104 : vector<1x1x64xf32> to vector<1x64xf32>
    %106 = vector.broadcast %105 : vector<1x64xf32> to vector<8x64xf32>
    %107 = arith.addf %103, %106 : vector<8x64xf32>
    %cst_49 = arith.constant 0.000000e+00 : f32
    %108 = vector.broadcast %cst_49 : f32 to vector<8x64xf32>
    %109 = arith.maximumf %107, %108 : vector<8x64xf32>
    %110 = arith.truncf %109 : vector<8x64xf32> to vector<8x64xbf16>
    %c0_50 = arith.constant 0 : index
    %c0_51 = arith.constant 0 : index
    %c0_52 = arith.constant 0 : index
    %111 = vector.load %arg16[%c0_50, %c0_51, %c0_52] : memref<1x64x32xbf16, #tpu.memory_space<vmem>>, vector<1x64x32xbf16>
    %112 = vector.shape_cast %111 : vector<1x64x32xbf16> to vector<64x32xbf16>
    %cst_53 = arith.constant dense<0.000000e+00> : vector<8x32xf32>
    %113 = tpu.matmul %110, %112, %cst_53 {dimension_numbers = #tpu.dot_dimension_numbers<[1], [0], [0], [1], [0, 0, 1, 1], [], []>} : vector<8x64xbf16>, vector<64x32xbf16>, vector<8x32xf32> -> vector<8x32xf32>
    %c0_54 = arith.constant 0 : index
    %c0_55 = arith.constant 0 : index
    %c0_56 = arith.constant 0 : index
    %114 = vector.load %arg17[%c0_54, %c0_55, %c0_56] : memref<1x1x32xf32, #tpu.memory_space<vmem>>, vector<1x1x32xf32>
    %115 = vector.shape_cast %114 : vector<1x1x32xf32> to vector<1x32xf32>
    %116 = vector.broadcast %115 : vector<1x32xf32> to vector<8x32xf32>
    %117 = arith.addf %113, %116 : vector<8x32xf32>
    %118 = arith.addf %117, %99 : vector<8x32xf32>
    %cst_57 = arith.constant dense<0.000000e+00> : vector<8xf32>
    %119 = vector.multi_reduction <add>, %118, %cst_57 [1] : vector<8x32xf32> to vector<8xf32>
    %120 = vector.shape_cast %119 : vector<8xf32> to vector<8x1xf32>
    %cst_58 = arith.constant 3.200000e+01 : f32
    %121 = vector.broadcast %cst_58 : f32 to vector<8x1xf32>
    %122 = arith.divf %120, %121 : vector<8x1xf32>
    %123 = vector.broadcast %122 : vector<8x1xf32> to vector<8x32xf32>
    %124 = arith.subf %118, %123 : vector<8x32xf32>
    %125 = arith.mulf %124, %124 : vector<8x32xf32>
    %cst_59 = arith.constant dense<0.000000e+00> : vector<8xf32>
    %126 = vector.multi_reduction <add>, %125, %cst_59 [1] : vector<8x32xf32> to vector<8xf32>
    %127 = vector.shape_cast %126 : vector<8xf32> to vector<8x1xf32>
    %cst_60 = arith.constant 3.200000e+01 : f32
    %128 = vector.broadcast %cst_60 : f32 to vector<8x1xf32>
    %129 = arith.divf %127, %128 : vector<8x1xf32>
    %130 = vector.broadcast %122 : vector<8x1xf32> to vector<8x32xf32>
    %131 = arith.subf %118, %130 : vector<8x32xf32>
    %cst_61 = arith.constant 9.99999974E-6 : f32
    %132 = vector.broadcast %cst_61 : f32 to vector<8x1xf32>
    %133 = arith.addf %129, %132 : vector<8x1xf32>
    %134 = math.rsqrt %133 : vector<8x1xf32>
    %135 = vector.broadcast %134 : vector<8x1xf32> to vector<8x32xf32>
    %136 = arith.mulf %131, %135 : vector<8x32xf32>
    %c0_62 = arith.constant 0 : index
    %c0_63 = arith.constant 0 : index
    %c0_64 = arith.constant 0 : index
    %137 = vector.load %arg18[%c0_62, %c0_63, %c0_64] : memref<1x1x32xf32, #tpu.memory_space<vmem>>, vector<1x1x32xf32>
    %138 = vector.shape_cast %137 : vector<1x1x32xf32> to vector<1x32xf32>
    %139 = vector.broadcast %138 : vector<1x32xf32> to vector<8x32xf32>
    %140 = arith.mulf %136, %139 : vector<8x32xf32>
    %c0_65 = arith.constant 0 : index
    %c0_66 = arith.constant 0 : index
    %c0_67 = arith.constant 0 : index
    %141 = vector.load %arg19[%c0_65, %c0_66, %c0_67] : memref<1x1x32xf32, #tpu.memory_space<vmem>>, vector<1x1x32xf32>
    %142 = vector.shape_cast %141 : vector<1x1x32xf32> to vector<1x32xf32>
    %143 = vector.broadcast %142 : vector<1x32xf32> to vector<8x32xf32>
    %144 = arith.addf %140, %143 : vector<8x32xf32>
    %c0_68 = arith.constant 0 : index
    %c0_69 = arith.constant 0 : index
    %145 = vector.load %arg21[%c0_68, %c0_69] : memref<8x32xf32, #tpu.memory_space<vmem>>, vector<8x32xf32>
    tpu.vector_store %arg21[%c0_68, %c0_69], %144 {strides = array<i32>} : memref<8x32xf32, #tpu.memory_space<vmem>>, vector<8x32xf32>,
    %c1_i32 = arith.constant 1 : i32
    %146 = arith.cmpi eq, %arg1, %c1_i32 : i32
    %147 = arith.extui %146 : i1 to i32
    %c0_i32_70 = arith.constant 0 : i32
    %148 = arith.cmpi ne, %147, %c0_i32_70 : i32
    scf.if %148 {
      %149 = arith.truncf %144 : vector<8x32xf32> to vector<8x32xbf16>
      %c0_71 = arith.constant 0 : index
      %c0_72 = arith.constant 0 : index
      %c0_73 = arith.constant 0 : index
      %150 = vector.load %arg20[%c0_71, %c0_72, %c0_73] : memref<1x8x32xbf16, #tpu.memory_space<vmem>>, vector<1x8x32xbf16>
      %151 = vector.shape_cast %150 : vector<1x8x32xbf16> to vector<8x32xbf16>
      %152 = vector.shape_cast %149 : vector<8x32xbf16> to vector<1x8x32xbf16>
      tpu.vector_store %arg20[%c0_71, %c0_72, %c0_73], %152 {strides = array<i32>} : memref<1x8x32xbf16, #tpu.memory_space<vmem>>, vector<1x8x32xbf16>,
    } else {
    }
    return
  }
  func.func @transform_0(%arg0: i32, %arg1: i32) -> (i32, i32, i32) {
    %c0_i32 = arith.constant 0 : i32
    %c0_i32_0 = arith.constant 0 : i32
    %c0_i32_1 = arith.constant 0 : i32
    return %arg0, %c0_i32, %c0_i32_0 : i32, i32, i32
  }
  func.func @transform_1(%arg0: i32, %arg1: i32) -> (i32, i32) {
    %c0_i32 = arith.constant 0 : i32
    %c0_i32_0 = arith.constant 0 : i32
    %c0_i32_1 = arith.constant 0 : i32
    return %c0_i32, %c0_i32_0 : i32, i32
  }
  func.func @transform_2(%arg0: i32, %arg1: i32) -> (i32, i32) {
    %c0_i32 = arith.constant 0 : i32
    %c0_i32_0 = arith.constant 0 : i32
    %c0_i32_1 = arith.constant 0 : i32
    return %c0_i32, %c0_i32_0 : i32, i32
  }
  func.func @transform_3(%arg0: i32, %arg1: i32) -> (i32, i32, i32) {
    %c0_i32 = arith.constant 0 : i32
    %c0_i32_0 = arith.constant 0 : i32
    %c0_i32_1 = arith.constant 0 : i32
    return %arg0, %c0_i32, %c0_i32_0 : i32, i32, i32
  }
  func.func @transform_4(%arg0: i32, %arg1: i32) -> (i32, i32, i32) {
    %c0_i32 = arith.constant 0 : i32
    %c0_i32_0 = arith.constant 0 : i32
    %c0_i32_1 = arith.constant 0 : i32
    return %arg0, %c0_i32, %c0_i32_0 : i32, i32, i32
  }
  func.func @transform_5(%arg0: i32, %arg1: i32) -> (i32, i32, i32) {
    %c0_i32 = arith.constant 0 : i32
    %c0_i32_0 = arith.constant 0 : i32
    %c0_i32_1 = arith.constant 0 : i32
    return %arg0, %c0_i32, %c0_i32_0 : i32, i32, i32
  }
  func.func @transform_6(%arg0: i32, %arg1: i32) -> (i32, i32, i32) {
    %c0_i32 = arith.constant 0 : i32
    %c0_i32_0 = arith.constant 0 : i32
    %c0_i32_1 = arith.constant 0 : i32
    return %arg1, %c0_i32, %c0_i32_0 : i32, i32, i32
  }
  func.func @transform_7(%arg0: i32, %arg1: i32) -> (i32, i32, i32) {
    %c0_i32 = arith.constant 0 : i32
    %c0_i32_0 = arith.constant 0 : i32
    %c0_i32_1 = arith.constant 0 : i32
    return %arg1, %c0_i32, %c0_i32_0 : i32, i32, i32
  }
  func.func @transform_8(%arg0: i32, %arg1: i32) -> (i32, i32, i32) {
    %c0_i32 = arith.constant 0 : i32
    %c0_i32_0 = arith.constant 0 : i32
    %c0_i32_1 = arith.constant 0 : i32
    return %arg1, %c0_i32, %c0_i32_0 : i32, i32, i32
  }
  func.func @transform_9(%arg0: i32, %arg1: i32) -> (i32, i32, i32) {
    %c0_i32 = arith.constant 0 : i32
    %c0_i32_0 = arith.constant 0 : i32
    %c0_i32_1 = arith.constant 0 : i32
    return %arg1, %c0_i32, %c0_i32_0 : i32, i32, i32
  }
  func.func @transform_10(%arg0: i32, %arg1: i32) -> (i32, i32, i32) {
    %c0_i32 = arith.constant 0 : i32
    %c0_i32_0 = arith.constant 0 : i32
    %c0_i32_1 = arith.constant 0 : i32
    return %arg1, %c0_i32, %c0_i32_0 : i32, i32, i32
  }
  func.func @transform_11(%arg0: i32, %arg1: i32) -> (i32, i32, i32) {
    %c0_i32 = arith.constant 0 : i32
    %c0_i32_0 = arith.constant 0 : i32
    %c0_i32_1 = arith.constant 0 : i32
    return %arg1, %c0_i32, %c0_i32_0 : i32, i32, i32
  }
  func.func @transform_12(%arg0: i32, %arg1: i32) -> (i32, i32, i32) {
    %c0_i32 = arith.constant 0 : i32
    %c0_i32_0 = arith.constant 0 : i32
    %c0_i32_1 = arith.constant 0 : i32
    return %arg1, %c0_i32, %c0_i32_0 : i32, i32, i32
  }
  func.func @transform_13(%arg0: i32, %arg1: i32) -> (i32, i32, i32) {
    %c0_i32 = arith.constant 0 : i32
    %c0_i32_0 = arith.constant 0 : i32
    %c0_i32_1 = arith.constant 0 : i32
    return %arg1, %c0_i32, %c0_i32_0 : i32, i32, i32
  }
  func.func @transform_14(%arg0: i32, %arg1: i32) -> (i32, i32, i32) {
    %c0_i32 = arith.constant 0 : i32
    %c0_i32_0 = arith.constant 0 : i32
    %c0_i32_1 = arith.constant 0 : i32
    return %arg1, %c0_i32, %c0_i32_0 : i32, i32, i32
  }
  func.func @transform_15(%arg0: i32, %arg1: i32) -> (i32, i32, i32) {
    %c0_i32 = arith.constant 0 : i32
    %c0_i32_0 = arith.constant 0 : i32
    %c0_i32_1 = arith.constant 0 : i32
    return %arg1, %c0_i32, %c0_i32_0 : i32, i32, i32
  }
  func.func @transform_16(%arg0: i32, %arg1: i32) -> (i32, i32, i32) {
    %c0_i32 = arith.constant 0 : i32
    %c0_i32_0 = arith.constant 0 : i32
    %c0_i32_1 = arith.constant 0 : i32
    return %arg1, %c0_i32, %c0_i32_0 : i32, i32, i32
  }
  func.func @transform_17(%arg0: i32, %arg1: i32) -> (i32, i32, i32) {
    %c0_i32 = arith.constant 0 : i32
    %c0_i32_0 = arith.constant 0 : i32
    %c0_i32_1 = arith.constant 0 : i32
    return %arg1, %c0_i32, %c0_i32_0 : i32, i32, i32
  }
  func.func @transform_18(%arg0: i32, %arg1: i32) -> (i32, i32, i32) {
    %c0_i32 = arith.constant 0 : i32
    %c0_i32_0 = arith.constant 0 : i32
    %c0_i32_1 = arith.constant 0 : i32
    return %arg0, %c0_i32, %c0_i32_0 : i32, i32, i32
  }
}

</mosaic_0001>

<bundles_post_ra>
// kernel: tpu_custom_call.1
= control target key start
LH: loop header
LB: loop body
LE: loop exit
PB: predicated region body
PF: predicated region fallthrough
CT: control target
= control target key end

     0   :  { %s3053_s0 = inlined_call_operand.vmem [shape: bf16[2,8,48], index: 0, kind: input, shape index: {}]   ;;  %s3054_s1 = inlined_call_operand.vmem [shape: bf16[48,32], index: 1, kind: input, shape index: {}]   ;;  %s3055_s2 = inlined_call_operand.vmem [shape: f32[1,32], index: 2, kind: input, shape index: {}]   ;;  %s3056_s3 = inlined_call_operand.vmem [shape: f32[2,8,32], index: 3, kind: input, shape index: {}]   ;;  %s3057_s4 = inlined_call_operand.hbm [shape: f32[2,8,32], index: 4, kind: input, shape index: {}]   ;;  %s3058_s5 = inlined_call_operand.vmem [shape: f32[2,1,8], index: 5, kind: input, shape index: {}]   ;;  %s3059_s6 = inlined_call_operand.vmem [shape: bf16[2,32,96], index: 6, kind: input, shape index: {}]   ;;  %s3060_s7 = inlined_call_operand.vmem [shape: f32[2,1,96], index: 7, kind: input, shape index: {}]   ;;  %s3061_s8 = inlined_call_operand.vmem [shape: bf16[2,32,32], index: 8, kind: input, shape index: {}]   ;;  %s3062_s9 = inlined_call_operand.vmem [shape: f32[2,1,32], index: 9, kind: input, shape index: {}]   ;;  %s3063_s10 = inlined_call_operand.hbm [shape: f32[2,1,32], index: 10, kind: input, shape index: {}]   ;;  %s3064_s11 = inlined_call_operand.hbm [shape: f32[2,1,32], index: 11, kind: input, shape index: {}]   ;;  %s3065_s12 = inlined_call_operand.vmem [shape: bf16[2,32,64], index: 12, kind: input, shape index: {}]   ;;  %s3066_s13 = inlined_call_operand.hbm [shape: f32[2,1,64], index: 13, kind: input, shape index: {}]   ;;  %s3067_s14 = inlined_call_operand.vmem [shape: bf16[2,64,32], index: 14, kind: input, shape index: {}]   ;;  %s3068_s15 = inlined_call_operand.vmem [shape: f32[2,1,32], index: 15, kind: input, shape index: {}]   ;;  %s3069_s16 = inlined_call_operand.vmem [shape: f32[2,1,32], index: 16, kind: input, shape index: {}]   ;;  %s3070_s17 = inlined_call_operand.vmem [shape: f32[2,1,32], index: 17, kind: input, shape index: {}]   ;;  %s3071_s18 = inlined_call_operand.hbm [shape: bf16[2,8,32], index: 18, kind: output, shape index: {}]  }
   0x1   :  { %3099 = sst [smem:[#allocation34_spill]] %s3053_s0 }
   0x2   :  { %3100 = sst [smem:[#allocation35_spill]] %s3054_s1 }
   0x3   :  { %3101 = sst [smem:[#allocation36_spill]] %s3055_s2 }
   0x4   :  { %3102 = sst [smem:[#allocation37_spill]] %s3056_s3 }
   0x5   :  { %3103 = sst [smem:[#allocation38_spill]] %s3057_s4 }
   0x6   :  { %3104 = sst [smem:[#allocation39_spill]] %s3058_s5 }
   0x7   :  { %3105 = sst [smem:[#allocation40_spill]] %s3059_s6 }
   0x8   :  { %3106 = sst [smem:[#allocation41_spill]] %s3060_s7 }
   0x9   :  { %3107 = sst [smem:[#allocation42_spill]] %s3061_s8 }
   0xa   :  { %3108 = sst [smem:[#allocation43_spill]] %s3062_s9 }
   0xb   :  { %3109 = sst [smem:[#allocation44_spill]] %s3063_s10 }
   0xc   :  { %3110 = sst [smem:[#allocation45_spill]] %s3064_s11 }
   0xd   :  { %3111 = sst [smem:[#allocation46_spill]] %s3065_s12 }
   0xe   :  { %3112 = sst [smem:[#allocation47_spill]] %s3066_s13 }
   0xf   :  { %3113 = sst [smem:[#allocation48_spill]] %s3067_s14 }
  0x10   :  { %3114 = sst [smem:[#allocation49_spill]] %s3068_s15 }
  0x11   :  { %3115 = sst [smem:[#allocation50_spill]] %s3069_s16 }
  0x12   :  { %3116 = sst [smem:[#allocation51_spill]] %s3070_s17 }
  0x13   :  { %3117 = sst [smem:[#allocation52_spill]] %s3071_s18 }
  0x14   :  { %23 = vsyncpa [#allocation4], 0 }
  0x15   :  { %25 = vsyncpa [#allocation4 + $0x1], 0 }
  0x16   :  { %26 = vsyncpa [#allocation7], 0 }
  0x17   :  { %28 = vsyncpa [#allocation7 + $0x1], 0 }
  0x18   :  { %29 = vsyncpa [#allocation10], 0 }
  0x19   :  { %31 = vsyncpa [#allocation10 + $0x1], 0 }
  0x1a   :  { %32 = vsyncpa [#allocation5], 0 }
  0x1b   :  { %34 = vsyncpa [#allocation5 + $0x1], 0  ;;  %s2570_s27 = smov 0   ;;  %s2572_s28 = smov 0  }
  0x1c   :  { %s2574_s29 = smov 0   ;;  %s2576_s30 = smov 0  }
  0x1d   :  { %s2578_s0 = smov 0   ;;  %s2580_s19 = smov 0  }
  0x1e   :  { %s2582_s1 = smov 0   ;;  %s2584_s20 = smov 0  }
  0x1f   :  { %s2586_s21 = smov 0   ;;  %s2588_s22 = smov 0  }
  0x20   :  { %s2590_s2 = smov 0  }
  0x21 LB: > { %3118 = sst [smem:[#allocation16_spill]] %s2423_s28  ;;  %s2624_s23 = sadd.s32 4294967295, %s2459_s2   ;;  %s2459_s2 = sphi %s2590_s2, %s40_s2   ;;  %s2455_s22 = sphi %s2588_s22, %s3204_s22   ;;  %s2451_s21 = sphi %s2586_s21, %s3203_s21   ;;  %s2447_s20 = sphi %s2584_s20, %s3202_s20   ;;  %s2443_s1 = sphi %s2582_s1, %s3201_s1   ;;  %s2439_s19 = sphi %s2580_s19, %s3200_s19   ;;  %s2435_s0 = sphi %s2578_s0, %s3199_s0   ;;  %s2431_s30 = sphi %s2576_s30, %s3198_s30   ;;  %s2427_s29 = sphi %s2574_s29, %s3197_s29   ;;  %s2423_s28 = sphi %s2572_s28, %s3196_s28   ;;  %s2419_s27 = sphi %s2570_s27, %s3195_s27  }
  0x22   : > { %3119 = sst [smem:[#allocation17_spill]] %s2427_s29  ;;  %s49_s24 = sadd.s32 1, %s2451_s21 }
  0x23   : > { %3120 = sst [smem:[#allocation18_spill]] %s2431_s30  ;;  %p2627_p0 = scmp.ge.s32.totalorder %s49_s24, 2 }
  0x24   : > { %3121 = sst [smem:[#allocation19_spill]] %s2435_s0  ;;  %p161_p1 = scmp.eq.s32.totalorder %s2459_s2, 0 }
  0x25   : > { %3122 = sst [smem:[#allocation20_spill]] %s2439_s19  ;;  %p3077_p2 = scmp.eq.s32.totalorder %s2624_s23, 0 }
  0x26   : > { %3123 = sst [smem:[#allocation21_spill]] %s2443_s1  ;;  %s309_s26 = sadd.s32 1, %s2427_s29 }
  0x27   : > { %3124 = sst [smem:[#allocation22_spill]] %s2447_s20  ;;  %s3206_s24 = smov (%p2627_p0, %s49_s24), 0 }
  0x28   : > { %3125 = sst [smem:[#allocation23_spill]] %s2451_s21  ;;  %p316_p3 = scmp.ne.s32.totalorder %s2427_s29, %s2423_s28 }
  0x29   : > { %3126 = sst [smem:[#allocation24_spill]] %s2455_s22  ;;  %p322_p4 = scmp.ne.s32.totalorder %s2423_s28, %s2419_s27 }
  0x2a   : > { %3127 = sst [smem:[#allocation25_spill]] %s2459_s2  ;;  %s306_s18 = ssub.s32 %s2451_s21, %s3206_s24 }
  0x2b   : > { %3129 = sst [smem:[#allocation26_spill]] %s3206_s24  ;;  %p307_p5 = scmp.eq.s32.totalorder %s306_s18, 0 }
  0x2c   : > { %p318_p6 = por %p316_p3, %p161_p1  ;;  %p2647_p7 = por %p322_p4, %p3077_p2 }
  0x2d   : > { %p3076_p8 = scmp.lt.s32.totalorder %s2459_s2, 4  ;;  %s626_s15 = sand.u32 1, %s2459_s2  }
  0x2e   : > { %s3130_s17 = scalar_select %p2647_p7, 1, 0 }
  0x2f   : > { %s2653_s16 = scalar_select %p307_p5, %s2427_s29, %s309_s26  }
  0x30   : > { %3131 = sst [smem:[#allocation27_spill]] %s3130_s17  ;;  %s2657_s14 = sand.u32 1, %s2427_s29  }
  0x31   : > { %3132 = sst [smem:[#allocation28_spill]] %s2653_s16  ;;  %s2660_s12 = sshll.u32 %s2451_s21, 4 }
  0x32   : > { %s629_s27 = scalar_lea.vmem [#allocation6], %s2657_s14  ;;  %s3133_s10 = sld [smem:[#allocation44_spill]] }
  0x33   : > { %s636_s24 = sshll.u32 %s629_s27, 4  ;;  %p2669_p9 = pnand %p3076_p8, %p318_p6  ;;  %s637_s24 = int_to_ptr.vmem [resolvable:$true] %s636_s24 }
  0x34   : > { %p1911_p10 = scmp.ge.s32.totalorder %s2459_s2, 1  ;;  %p709_p11 = scmp.lt.s32.totalorder %s2459_s2, 5 }
  0x35   : > { %s2675_s26 = scalar_lea.sflag [#allocation7], %s626_s15  ;;  %p3078_p12 = pneg %p2669_p9 }
  0x36   : > { %s2232_s21 = scalar_lea.vmem %s637_s24, 16  ;;  %s2461_s9 = smov [#allocation6]  }
  0x37   : > { %p2233_p13 = scmp.ne.s32.totalorder %s637_s24, %s2232_s21  ;;  %s2237_s27 = sshll.u32 %s2461_s9, 4  ;;  %s2238_s27 = int_to_ptr.vmem [resolvable:$false] %s2237_s27 }
  0x38   : > { %s634_s8 = scalar_lea.hbm %s3133_s10, %s2660_s12  ;;  %s2239_s18 = scalar_lea.vmem %s2238_s27, 32 }
  0x39   : > { %p2235_p3 = pnand %p2233_p13, %p3078_p12  ;;  %p2240_p5 = scmp.lt.s32.totalorder %s637_s24, %s2238_s27 }
  0x3a   : > { %p2241_p6 = scmp.lt.s32.totalorder %s2239_s18, %s2232_s21 }
  0x3b   : > { %p2236_p4 = pneg %p2235_p3 }
  0x3c   : > { %p2242_p8 = por %p2241_p6, %p2240_p5 }
  0x3e   : > { %p2243_p2 = pnand %p2242_p8, %p2236_p4 }
  0x40   : > { %2246 = shalt.err (!%p2243_p2)
}
  0x41   : > { %2084 = dma.hbm_to_vmem [thread:$0]  (!%p2669_p9), %s634_s8, 16, %s637_s24, %s2675_s26  }
  0x42   : > { %p2689_p2 = pnand %p1911_p10, %p709_p11  ;;  %s1903_s21 = sadd.s32 4294967294, %s2459_s2  }
  0x43   : > { %s52_s9 = sadd.s32 1, %s2455_s22  ;;  %s153_s27 = sadd.s32 1, %s2439_s19 }
  0x44   : > { %s3208_s9 = smov (!%p2627_p0, %s52_s9), %s2455_s22  ;;  %p160_p8 = scmp.ne.s32.totalorder %s2439_s19, %s2435_s0 }
  0x45   : > { %p166_p13 = scmp.ne.s32.totalorder %s2435_s0, %s2431_s30  ;;  %p54_p3 = scmp.ge.s32.totalorder %s3208_s9, 2 }
  0x46   : > { %p528_p4 = scmp.eq.s32.totalorder %s2624_s23, 3  ;;  %p2706_p5 = por %p161_p1, %p160_p8 }
  0x47   : > { %p3137_p10 = scmp.eq.s32.totalorder %s2624_s23, 0  ;;  %s3210_s9 = smov (%p54_p3, %s3208_s9), 0 }
  0x48   : > { %3139 = sst [smem:[#allocation29_spill]] %s3210_s9  ;;  %p2718_p0 = por %p528_p4, %p160_p8 }
  0x49   : > { %p2712_p11 = por %p3137_p10, %p166_p13  ;;  %p534_p1 = scmp.eq.s32.totalorder %s1903_s21, 3 }
  0x4a   : > { %s3140_s25 = scalar_select %p2718_p0, 1, 0 }
  0x4b   : > { %s3138_s24 = scalar_select %p2712_p11, 1, 0 }
  0x4c   : > { %3141 = sst [smem:[#allocation30_spill]] %s3140_s25  ;;  %s150_s18 = ssub.s32 %s2455_s22, %s3210_s9 }
  0x4d   : > { %s574_s10 = sand.u32 1, %s2439_s19   ;;  %p151_p6 = scmp.eq.s32.totalorder %s150_s18, 0 }
  0x4e   : > { %p2725_p12 = por %p534_p1, %p166_p13  ;;  %s1906_s29 = sshll.u32 %s574_s10, 3 }
  0x4f   : > { %s2730_s30 = scalar_select %p151_p6, %s2439_s19, %s153_s27  }
  0x50   : > { %s3142_s16 = scalar_select %p2725_p12, 1, 0 }
  0x51   : > { %3144 = sst [smem:[#allocation32_spill]] %s2730_s30  ;;  %s1907_s6 = sshll.u32 %s2455_s22, 7 }
  0x52   : > { %3143 = sst [smem:[#allocation31_spill]] %s3142_s16  ;;  %s578_s20 = scalar_lea.vmem [#allocation3], %s1906_s29 }
  0x53   : > { %s3145_s4 = sld [smem:[#allocation38_spill]]  ;;  %s585_s17 = sshll.u32 %s578_s20, 4  ;;  %s586_s17 = int_to_ptr.vmem [resolvable:$true] %s585_s17 }
  0x54   : > { %p3146_p8 = scmp.lt.s32.totalorder %s2459_s2, 4  ;;  %s3148_s11 = sld [smem:[#allocation45_spill]] }
  0x55   : > { %s646_s30 = scalar_lea.vmem [#allocation8], %s2657_s14  ;;  %s575_s19 = scalar_lea.sflag [#allocation4], %s574_s10 }
  0x56   : > { %p2740_p3 = pnand %p3146_p8, %p2706_p5  ;;  %s653_s22 = sshll.u32 %s646_s30, 4  ;;  %s654_s22 = int_to_ptr.vmem [resolvable:$true] %s653_s22 }
  0x57   : > { %s2260_s3 = scalar_lea.vmem %s586_s17, 128  ;;  %s2462_s5 = smov [#allocation3]  }
  0x58   : > { %p2249_p13 = pneg %p2740_p3  ;;  %p2261_p4 = scmp.ne.s32.totalorder %s586_s17, %s2260_s3 }
  0x59   : > { %s583_s1 = scalar_lea.hbm %s3145_s4, %s1907_s6  ;;  %s2265_s6 = sshll.u32 %s2462_s5, 4  ;;  %s2266_s6 = int_to_ptr.vmem [resolvable:$false] %s2265_s6 }
  0x5a   : > { %s651_s27 = scalar_lea.hbm %s3148_s11, %s2660_s12  ;;  %p2263_p10 = pnand %p2261_p4, %p2249_p13 }
  0x5b   : > { %s2267_s29 = scalar_lea.vmem %s2266_s6, 256  ;;  %p2268_p5 = scmp.lt.s32.totalorder %s586_s17, %s2266_s6 }
  0x5c   : > { %p2264_p1 = pneg %p2263_p10  ;;  %p2269_p6 = scmp.lt.s32.totalorder %s2267_s29, %s2260_s3 }
  0x5e   : > { %p2270_p8 = por %p2269_p6, %p2268_p5 }
  0x60   : > { %p2271_p12 = pnand %p2270_p8, %p2264_p1 }
  0x62   : > { %2274 = shalt.err (!%p2271_p12)
}
  0x63   : > { %2081 = dma.hbm_to_vmem [thread:$0]  (!%p2740_p3), %s583_s1, 128, %s586_s17, %s575_s19  }
  0x64   : > { %s2288_s10 = scalar_lea.vmem %s654_s22, 16  ;;  %p3149_p7 = pneg %p2669_p9 }
  0x65   : > { %p2289_p0 = scmp.ne.s32.totalorder %s654_s22, %s2288_s10  ;;  %s2463_s30 = smov [#allocation8]  }
  0x66   : > { %s2293_s20 = sshll.u32 %s2463_s30, 4  ;;  %s2294_s20 = int_to_ptr.vmem [resolvable:$false] %s2293_s20 }
  0x67   : > { %p2291_p13 = pnand %p2289_p0, %p3149_p7  ;;  %s2295_s9 = scalar_lea.vmem %s2294_s20, 32 }
  0x68   : > { %p2296_p10 = scmp.lt.s32.totalorder %s654_s22, %s2294_s20  ;;  %p2297_p11 = scmp.lt.s32.totalorder %s2295_s9, %s2288_s10 }
  0x69   : > { %p2292_p4 = pneg %p2291_p13 }
  0x6a   : > { %p2298_p5 = por %p2297_p11, %p2296_p10 }
  0x6c   : > { %p2299_p1 = pnand %p2298_p5, %p2292_p4 }
  0x6e   : > { %2302 = shalt.err (!%p2299_p1)
}
  0x6f   : > { %2087 = dma.hbm_to_vmem [thread:$0]  (!%p2669_p9), %s651_s27, 16, %s654_s22, %s2675_s26  }
  0x70   : > { %s3150_s13 = sld [smem:[#allocation47_spill]]  ;;  %s671_s18 = scalar_lea.vmem [#allocation9], %s2657_s14 }
  0x71   : > { %s678_s3 = sshll.u32 %s671_s18, 4  ;;  %s669_s5 = scalar_lea.sflag [#allocation10], %s2657_s14  ;;  %s679_s3 = int_to_ptr.vmem [resolvable:$true] %s678_s3 }
  0x72   : > { %s2316_s6 = scalar_lea.vmem %s679_s3, 16  ;;  %p3151_p12 = pneg %p2669_p9 }
  0x73   : > { %p2317_p7 = scmp.ne.s32.totalorder %s679_s3, %s2316_s6  ;;  %s2464_s29 = smov [#allocation9]  }
  0x74   : > { %s2321_s10 = sshll.u32 %s2464_s29, 4  ;;  %s2322_s10 = int_to_ptr.vmem [resolvable:$false] %s2321_s10 }
  0x75   : > { %p2319_p11 = pnand %p2317_p7, %p3151_p12  ;;  %s2323_s30 = scalar_lea.vmem %s2322_s10, 32 }
  0x76   : > { %s676_s21 = scalar_lea.hbm %s3150_s13, %s2660_s12  ;;  %p2324_p3 = scmp.lt.s32.totalorder %s679_s3, %s2322_s10 }
  0x77   : > { %p2320_p0 = pneg %p2319_p11  ;;  %p2325_p6 = scmp.lt.s32.totalorder %s2323_s30, %s2316_s6 }
  0x79   : > { %p2326_p8 = por %p2325_p6, %p2324_p3 }
  0x7b   : > { %p2327_p13 = pnand %p2326_p8, %p2320_p0 }
  0x7d   : > { %2330 = shalt.err (!%p2327_p13)
}
  0x7e   : > { %2090 = dma.hbm_to_vmem [thread:$0]  (!%p2669_p9), %s676_s21, 16, %s679_s3, %s669_s5  }
  0x7f   : > { %713 = sbr.rel (%p2689_p2) target bundleno = 3177 (0xc69), region = 92 }
  0x84   : > { %s2778_s12 = sand.u32 1, %s2435_s0   ;;  %p3153_p4 = scmp.ne.s32.totalorder %s3138_s24, 0 }
  0x85   : > { %3152 = sst [smem:[#allocation33_spill]] %s2778_s12  ;;  %s1912_s14 = sshll.u32 %s2778_s12, 3 }
  0x86   : > { %s716_s22 = scalar_lea.sflag [#allocation4], %s2778_s12  ;;  %s2782_s26 = scalar_lea.vmem [#allocation3], %s1912_s14 }
  0x87   : > { %2402 = dma.done.wait (%p3153_p4), %s716_s22, 128  }
  0x88   : > { %2404 = vsyncadd (%p3153_p4), %s716_s22, 4294967168  ;;  %s3154_s7 = sld [smem:[#allocation27_spill]]  ;;  %s724_s15 = sand.u32 1, %s2624_s23  }
  0x89   : > { %s2790_s27 = sand.u32 1, %s2423_s28   ;;  %s725_s20 = scalar_lea.sflag [#allocation7], %s724_s15 }
  0x8e   : > { %p3155_p9 = scmp.ne.s32.totalorder %s3154_s7, 0 }
  0x90   : > { %2406 = dma.done.wait (%p3155_p9), %s725_s20, 32  }
  0x91   : > { %2408 = vsyncadd (%p3155_p9), %s725_s20, 4294967264  ;;  %s741_s17 = scalar_lea.sflag [#allocation10], %s2790_s27 }
  0x92   : > { %2410 = dma.done.wait (%p3155_p9), %s741_s17, 16  }
  0x93   : > { %2412 = vsyncadd (%p3155_p9), %s741_s17, 4294967280  ;;  %s3156_s23 = sld [smem:[#allocation22_spill]]  ;;  %s1913_s8 = sshll.u32 %s2778_s12, 2 }
  0x94   : > { %s3157_s1 = sld [smem:[#allocation21_spill]] }
  0x95   : > { %s3158_s29 = sld [smem:[#allocation34_spill]] }
  0x96   : > { %s3159_s22 = sld [smem:[#allocation37_spill]] }
  0x97   : > { %s3161_s11 = sld [smem:[#allocation40_spill]] }
  0x98   : > { %s3165_s19 = sld [smem:[#allocation46_spill]] }
  0x99   : > { %p854_p2 = scmp.lt.s32.totalorder %s3156_s23, 1  ;;  %s3166_s25 = sld [smem:[#allocation48_spill]] }
  0x9a   : > { %p865_p10 = scmp.lt.s32.totalorder %s3157_s1, 1  ;;  %s3168_s12 = sld [smem:[#allocation50_spill]] }
  0x9b   : > { %s3212_s23 = smov (!%p854_p2, %s3156_s23), 1  ;;  %s3169_s15 = sld [smem:[#allocation51_spill]] }
  0x9c   : > { %s2811_s21 = scalar_select %p865_p10, %s3157_s1, 1 }
  0x9d   : > { %s1914_s18 = sshll.u32 %s3212_s23, 2  ;;  %s1915_s3 = sshll.u32 %s3212_s23, 3 }
  0x9e   : > { %s857_s10 = scalar_lea.vmem %s3158_s29, %s1914_s18  ;;  %s2821_s7 = scalar_lea.vmem %s3159_s22, %s1915_s3 }
  0x9f   : > { %s1963_s24 = sshll.u32 %s2811_s21, 4  ;;  %s3163_s29 = sld [smem:[#allocation42_spill]] }
  0xa0   : > { %s2831_s13 = scalar_lea.vmem %s3161_s11, %s1963_s24  ;;  %s2849_s2 = scalar_lea.vmem %s3165_s19, %s1963_s24 }
  0xa1   : > { %s1966_s4 = sshll.u32 %s2811_s21, 5  ;;  %s3167_s18 = sld [smem:[#allocation49_spill]] }
  0xa2   : > { %s2855_s28 = scalar_lea.vmem %s3166_s25, %s1966_s4  ;;  %s896_s3 = scalar_lea.vmem %s3168_s12, %s2811_s21 }
  0xa3   : > { %s899_s20 = scalar_lea.vmem %s3169_s15, %s2811_s21  ;;  %p1924_p5 = scmp.ne.s32.totalorder %s3157_s1, 0 }
  0xa4   : > { %s3170_s17 = sld [smem:[#allocation35_spill]] (!%p1924_p5) }
  0xa5   : > { %s2840_s30 = scalar_lea.vmem %s3163_s29, %s1963_s24  ;;  %s2869_s24 = scalar_lea.vmem [#allocation11], %s1913_s8 }
  0xa6   : > { %904 = sbr.rel (%p1924_p5) target bundleno = 386 (0x182), region = 112  ;;  %s3171_s11 = sld [smem:[#allocation36_spill]] (!%p1924_p5) }
  0xa7   : > { %s893_s6 = scalar_lea.vmem %s3167_s18, %s2811_s21 }
  0xab   : > { %v2194_v0 = vld [vmem:[%s3170_s17 + $0x10] sm:$0xff]   ;;  %v2465_v1 = vmov 0.0   ;;  %v2195_v2 = vld [vmem:[%s3170_s17 + $0x8] sm:$0xff]   ;;  %vm2466_vm0 = vmmov 0   ;;  %v2196_v3 = vld [vmem:[%s3170_s17] sm:$0xff]   ;;  %vm937_vm1 = vcmask 392192  }
  0xac   : > { %1994 = vmatprep.subr.bf16.mxu0 %v2465_v1  ;;  %2000 = vmatprep.mubr.msk.bf16.mxu0 %vm2466_vm0, %v2465_v1  ;;  %v905_v4 = vld [vmem:[%s857_s10] sm:$0xf]  ;;  %v984_v11 = vld [vmem:[%s2782_s26] sm:$0xff]  ;;  %vm986_vm2 = vcmask 261120  }
  0xad   : > { %1995 = vmatpush3.bf16.msra.mxu0 %v2194_v0  ;;  %v1925_v5 = vld [vmem:[%s3171_s11] ss:$0 sm:$0xff] }
  0xae   : > { %1996 = vmatprep.subr.bf16.mxu0 %v2465_v1  ;;  %v982_v8 = vld [vmem:[%s2821_s7] sm:$0xff] }
  0xb1   : > { %1997 = vmatpush3.bf16.msra.mxu0 %v2195_v2 }
  0xb2   : > { %1998 = vmatprep.subr.bf16.mxu0 %v2465_v1 }
  0xb5   : > { %1999 = vmatpush3.bf16.msra.mxu0 %v2196_v3 }
  0xb8   : > { %2001 = vmatmul.mubr.msk.bf16.vlgmr.msra.gmra.mxu0 %vm937_vm1, %v905_v4 }
 0x178   : > { %v975_v6 = vpop.f32.mrf.mxu0 }
 0x179   : > { %v976_v7 = vadd.f32 %v1925_v5, %v975_v6 }
 0x17a   : > { %v2002_v9 = vpop.f32.mrf.mxu0 }
 0x17b   : > { %v981_v10 = vmul.f32 5.656854, %v976_v7 }
 0x17c   : > { %v978_v12 = vpop.f32.mrf.mxu0 }
 0x17d   : > { %v983_v13 = vadd.f32 %v982_v8, %v981_v10 }
 0x17e   : > { %v2003_v14 = vpop.f32.mrf.mxu0 }
 0x17f   : > { %v985_v15 = vmul.f32 %v984_v11, %v983_v13 }
 0x181   : > { %987 = vst.msk [vmem:[#allocation2] sm:$0xff] %vm986_vm2, %v985_v15 }
 0x182 PF: > { %v2197_v16 = vld [vmem:[%s2831_s13 + $0x8] sm:$0xff]   ;;  %v2467_v17 = vmov 0.0   ;;  %v2198_v18 = vld [vmem:[%s2831_s13] sm:$0xff]   ;;  %vm2468_vm3 = vmmov 0   ;;  %vm1014_vm4 = vcmask 261120   ;;  %s3172_s10 = sld [smem:[#allocation41_spill]] }
 0x183   : > { %2004 = vmatprep.subr.bf16.mxu1 %v2467_v17  ;;  %2018 = vmatprep.subr.bf16.mxu0 %v2467_v17  ;;  %s2469_s9 = smov 64   ;;  %s2470_s16 = smov 96   ;;  %vm1078_vm5 = vcmask 130048   ;;  %vm1143_vm6 = vcmask 1043456   ;;  %vm1125_vm7 = vcmask 64512   ;;  %v2199_v53 = vld [vmem:[%s2840_s30] sm:$0xff]  }
 0x184   : > { %2005 = vmatpush3.bf16.msra.mxu1 %v2197_v16  ;;  %2008 = vmatprep.mubr.msk.bf16.mxu1 %vm2468_vm3, %v2467_v17  ;;  %s3174_s29 = sld [smem:[#allocation39_spill]]  ;;  %s2471_s22 = smov 80   ;;  %v2200_v8 = vld [vmem:[%s2840_s30 + $0x8] sm:$0xff]   ;;  %vm1542_vm8 = vcmask 523264  }
 0x185   : > { %2006 = vmatprep.subr.bf16.mxu1 %v2467_v17  ;;  %2020 = vmatprep.mubr.msk.bf16.mxu0 %vm2468_vm3, %v2467_v17  ;;  %s2473_s19 = smov 48   ;;  %s3176_s4 = sld [smem:[#allocation43_spill]] }
 0x186   : > { %s3179_s12 = scalar_lea.vmem [#allocation8], %s2790_s27  ;;  %s3180_s1 = scalar_lea.vmem [#allocation9], %s2790_s27 }
 0x188   : > { %v2892_v19 = vld [vmem:[#allocation2] sm:$0xff]  ;;  %2007 = vmatpush3.bf16.msra.mxu1 %v2198_v18  ;;  %s3173_s7 = scalar_lea.vmem %s3172_s10, %s2811_s21 }
 0x189   : > { %v989_v20 = vpack.c.bf16 %v2892_v19, %v2892_v19  ;;  %2012 = vmatprep.subr.bf16.mxu1 %v2467_v17  ;;  %v1930_v21 = vld [vmem:[%s3173_s7] ss:$0 sm:$0xff]  ;;  %s3184_s7 = sld [smem:[#allocation21_spill]] }
 0x18a   : > { %s3175_s14 = scalar_lea.vmem %s3174_s29, %s3212_s23  ;;  %s2472_s23 = smov 112  }
 0x18b   : > { %2009 = vmatmul.mubr.msk.bf16.vlgmr.msra.gmra.mxu1 %vm1014_vm4, %v989_v20  ;;  %v1935_v34 = vld [vmem:[%s3175_s14] ss:$0 sm:$0xff]  ;;  %s3177_s5 = scalar_lea.vmem %s3176_s4, %s2811_s21 }
 0x18c   : > { %2014 = vmatprep.mubr.msk.bf16.mxu1 %vm2468_vm3, %v2467_v17 }
 0x18f   : > { %p1958_p1 = scmp.ne.s32.totalorder %s3184_s7, 1 }
 0x24b   : > { %v1052_v22 = vpop.f32.mrf.mxu1 }
 0x24c   : > { %v1053_v23 = vadd.f32 %v1930_v21, %v1052_v22 }
 0x24d   : > { %v2010_v24 = vpop.f32.mrf.mxu1 }
 0x24e   : > { %v2908_v25 = vpack.c.bf16 %v1053_v23, %v1053_v23  ;;  %v1066_v32 = vmul.f32 0.25, %v1053_v23  ;;  %v1934_v24 = vld [vmem:[%s3177_s5] ss:$0 sm:$0xff] }
 0x24f   : > { %v1055_v26 = vpop.f32.mrf.mxu1 }
 0x250   : > { %1138 = vrot.lane.b32.xlu1 %v2908_v25, %s2469_s9  ;;  %1076 = vrot.lane.b32.xlu0 %v2908_v25, %s2470_s16  ;;  %v1067_v33 = vpack.c.bf16 %v1066_v32, %v1066_v32 }
 0x251   : > { %v2011_v27 = vpop.f32.mrf.mxu1 }
 0x2c2   : > { %v1139_v28 = vpop.permute.xlu1 %1138  ;;  %v1077_v29 = vpop.permute.xlu0 %1076 }
 0x2c3   : > { %v1083_v30 = vsel %vm1078_vm5, %v1077_v29, 0  ;;  %v1145_v31 = vsel %vm1143_vm6, %v1139_v28, 0 }
 0x2c4   : > { %2013 = vmatpush3.bf16.xpose.msra.mxu1 %v1083_v30  ;;  %2019 = vmatpush3.bf16.msra.mxu0 %v1145_v31 }
 0x2c5   : > { %2030 = vmatprep.subr.bf16.mxu0 %v2467_v17  ;;  %2024 = vmatprep.subr.bf16.mxu1 %v2467_v17 }
 0x2cb   : > { %2015 = vmatmul.mubr.msk.bf16.vlgmr.msra.gmra.mxu1 %vm1078_vm5, %v1067_v33 }
 0x2cc   : > { %2026 = vmatprep.mubr.msk.bf16.mxu1 %vm2468_vm3, %v2467_v17  ;;  %2025 = vmatpush3.bf16.msra.mxu1 %v2199_v53  ;;  %v1946_v53 = vld [vmem:[%s3180_s1] ss:$0 sm:$0xff] }
 0x2cd   : > { %2036 = vmatprep.subr.bf16.mxu1 %v2467_v17 }
 0x38b   : > { %v1119_v35 = vpop.f32.mrf.mxu1 }
 0x38c   : > { %v1120_v36 = vadd.f32 %v1935_v34, %v1119_v35 }
 0x38d   : > { %v2016_v37 = vpop.f32.mrf.mxu1 }
 0x38e   : > { %v1126_v38 = vsel %vm1125_vm7, %v1120_v36, -inf }
 0x38f   : > { %1127 = vmax.xlane.f32.xlu0 %v1126_v38  ;;  %v1122_v39 = vpop.f32.mrf.mxu1  ;;  %v2202_v38 = vld [vmem:[%s2849_s2] sm:$0xff]  }
 0x390   : > { %v2203_v39 = vld [vmem:[%s2855_s28 + $0x18] sm:$0xff]  }
 0x391   : > { %v2017_v40 = vpop.f32.mrf.mxu1 }
 0x392   : > { %v2204_v40 = vld [vmem:[%s2855_s28 + $0x10] sm:$0xff]  }
 0x418   : > { %v1128_v41 = vpop.xlane.xlu0 %1127 }
 0x419   : > { %v1129_v42 = vsub.f32 %v1120_v36, %v1128_v41 }
 0x41b   : > { %v1130_v43 = vmul.f32 1.442695, %v1129_v42 }
 0x41d   : > { %2207 = vpow2.f32 %v1130_v43 }
 0x42a   : > { %v2208_v44 = vpop.eup %2207 }
 0x42b   : > { %v1132_v45 = vsel %vm1125_vm7, %v2208_v44, 0.0 }
 0x42c   : > { %1133 = vadd.xlane.f32.xlu1 %v1132_v45 }
 0x43d   : > { %1243 = vrot.lane.b32.xlu1 %v2908_v25, %s2471_s22 }
 0x441   : > { %1241 = vrot.lane.b32.xlu1 %v1067_v33, %s2472_s23 }
 0x4b5   : > { %v1134_v46 = vpop.xlane.xlu1 %1133 }
 0x4b6   : > { %2209 = vrcp.f32 %v1134_v46 }
 0x4b9   : > { %v1244_v49 = vpop.permute.xlu1 %1243 }
 0x4ba   : > { %v1249_v51 = vsel %vm1078_vm5, %v1244_v49, 0 }
 0x4bd   : > { %v1242_v52 = vpop.permute.xlu1 %1241 }
 0x4c3   : > { %v2210_v47 = vpop.eup %2209 }
 0x4c4   : > { %v1136_v48 = vmul.f32 %v2210_v47, %v2208_v44  ;;  %v1945_v47 = vld [vmem:[%s3179_s12] ss:$0 sm:$0xff] }
 0x4c6   : > { %v1137_v50 = vpack.c.bf16 %v1136_v48, %v1136_v48 }
 0x4c8   : > { %2021 = vmatmul.mubr.msk.bf16.vlgmr.msra.gmra.mxu0 %vm1125_vm7, %v1137_v50 }
 0x4c9   : > { %2031 = vmatpush3.bf16.xpose.msra.mxu0 %v1249_v51  ;;  %2032 = vmatprep.mubr.msk.bf16.mxu0 %vm2468_vm3, %v2467_v17  ;;  %v2205_v51 = vld [vmem:[%s2855_s28 + $0x8] sm:$0xff]  }
 0x4ca   : > { %2042 = vmatprep.subr.bf16.mxu0 %v2467_v17 }
 0x4d0   : > { %2033 = vmatmul.mubr.msk.bf16.vlgmr.msra.gmra.mxu0 %vm1078_vm5, %v1242_v52  ;;  %v2206_v52 = vld [vmem:[%s2855_s28] sm:$0xff]  }
 0x4d1   : > { %2044 = vmatprep.mubr.msk.bf16.mxu0 %vm2468_vm3, %v2467_v17  ;;  %2043 = vmatpush3.bf16.msra.mxu0 %v2200_v8 }
 0x4d2   : > { %2056 = vmatprep.subr.bf16.mxu0 %v2467_v17 }
 0x588   : > { %v1181_v54 = vpop.f32.mrf.mxu0 }
 0x589   : > { %v1187_v55 = vpack.c.bf16 %v1181_v54, %v1181_v54 }
 0x58a   : > { %v2022_v56 = vpop.f32.mrf.mxu0 }
 0x58b   : > { %2027 = vmatmul.mubr.msk.bf16.vlgmr.msra.gmra.mxu1 %vm1078_vm5, %v1187_v55 }
 0x58c   : > { %v1184_v57 = vpop.f32.mrf.mxu0  ;;  %2038 = vmatprep.mubr.msk.bf16.mxu1 %vm2468_vm3, %v2467_v17 }
 0x58e   : > { %v2023_v58 = vpop.f32.mrf.mxu0 }
 0x590   : > { %v1285_v59 = vpop.f32.mrf.mxu0 }
 0x591   : > { %v1286_v60 = vadd.f32 %v1935_v34, %v1285_v59 }
 0x592   : > { %v2034_v61 = vpop.f32.mrf.mxu0 }
 0x593   : > { %v1291_v62 = vsel %vm1125_vm7, %v1286_v60, -inf  ;;  %v1950_v61 = vld [vmem:[%s893_s6] ss:$0 sm:$0xff] }
 0x594   : > { %1292 = vmax.xlane.f32.xlu1 %v1291_v62  ;;  %v1288_v63 = vpop.f32.mrf.mxu0 }
 0x596   : > { %v2035_v0 = vpop.f32.mrf.mxu0 }
 0x61d   : > { %v1293_v1 = vpop.xlane.xlu1 %1292 }
 0x61e   : > { %v1294_v2 = vsub.f32 %v1286_v60, %v1293_v1 }
 0x620   : > { %v1295_v3 = vmul.f32 1.442695, %v1294_v2 }
 0x622   : > { %2211 = vpow2.f32 %v1295_v3 }
 0x62f   : > { %v2212_v4 = vpop.eup %2211 }
 0x630   : > { %v1297_v5 = vsel %vm1125_vm7, %v2212_v4, 0.0 }
 0x631   : > { %1298 = vadd.xlane.f32.xlu0 %v1297_v5 }
 0x647   : > { %1303 = vrot.lane.b32.xlu0 %v2908_v25, %s2473_s19  ;;  %v1065_v25 = vadd.f32 %v1934_v24, %v2892_v19  ;;  %v2201_v19 = vld [vmem:[%s2849_s2 + $0x8] sm:$0xff]   ;;  %s3178_s2 = scalar_lea.vmem [#allocation6], %s2790_s27 }
 0x648   : > { %v1944_v45 = vld [vmem:[%s3178_s2] ss:$0 sm:$0xff] }
 0x64b   : > { %v1233_v6 = vpop.f32.mrf.mxu1 }
 0x64c   : > { %v1239_v26 = vadd.f32 %v1233_v6, %v1065_v25 }
 0x64d   : > { %v2028_v7 = vpop.f32.mrf.mxu1 }
 0x64f   : > { %v1236_v9 = vpop.f32.mrf.mxu1 }
 0x651   : > { %v2029_v10 = vpop.f32.mrf.mxu1 }
 0x6ba   : > { %v1299_v11 = vpop.xlane.xlu0 %1298 }
 0x6bb   : > { %2213 = vrcp.f32 %v1299_v11 }
 0x6be   : > { %v1304_v12 = vpop.permute.xlu0 %1303 }
 0x6bf   : > { %v1309_v13 = vsel %vm1143_vm6, %v1304_v12, 0 }
 0x6c0   : > { %2037 = vmatpush3.bf16.msra.mxu1 %v1309_v13  ;;  %v1956_v13 = vld [vmem:[%s896_s3] ss:$0 sm:$0xff] }
 0x6c1   : > { %2048 = vmatprep.subr.bf16.mxu1 %v2467_v17 }
 0x6c8   : > { %v2214_v14 = vpop.eup %2213 }
 0x6c9   : > { %v1301_v15 = vmul.f32 %v2214_v14, %v2212_v4 }
 0x6cb   : > { %v1302_v16 = vpack.c.bf16 %v1301_v15, %v1301_v15  ;;  %v1957_v15 = vld [vmem:[%s899_s20] ss:$0 sm:$0xff] }
 0x6cd   : > { %2039 = vmatmul.mubr.msk.bf16.vlgmr.msra.gmra.mxu1 %vm1125_vm7, %v1302_v16 }
 0x6ce   : > { %2052 = vmatprep.mubr.msk.bf16.mxu1 %vm2468_vm3, %v2467_v17  ;;  %2049 = vmatpush3.bf16.msra.mxu1 %v2201_v19 }
 0x6cf   : > { %2050 = vmatprep.subr.bf16.mxu1 %v2467_v17 }
 0x6d2   : > { %2051 = vmatpush3.bf16.msra.mxu1 %v2202_v38 }
 0x78d   : > { %v1345_v18 = vpop.f32.mrf.mxu1 }
 0x78e   : > { %v1351_v20 = vpack.c.bf16 %v1345_v18, %v1345_v18 }
 0x78f   : > { %v2040_v21 = vpop.f32.mrf.mxu1 }
 0x790   : > { %2045 = vmatmul.mubr.msk.bf16.vlgmr.msra.gmra.mxu0 %vm1078_vm5, %v1351_v20 }
 0x791   : > { %v1348_v22 = vpop.f32.mrf.mxu1  ;;  %2064 = vmatprep.mubr.msk.bf16.mxu0 %vm2468_vm3, %v2467_v17  ;;  %2057 = vmatpush3.bf16.msra.mxu0 %v2203_v39 }
 0x792   : > { %2058 = vmatprep.subr.bf16.mxu0 %v2467_v17 }
 0x793   : > { %v2041_v23 = vpop.f32.mrf.mxu1 }
 0x795   : > { %2059 = vmatpush3.bf16.msra.mxu0 %v2204_v40 }
 0x796   : > { %2060 = vmatprep.subr.bf16.mxu0 %v2467_v17 }
 0x799   : > { %2061 = vmatpush3.bf16.msra.mxu0 %v2205_v51 }
 0x79a   : > { %2062 = vmatprep.subr.bf16.mxu0 %v2467_v17 }
 0x79d   : > { %2063 = vmatpush3.bf16.msra.mxu0 %v2206_v52 }
 0x850   : > { %v1397_v27 = vpop.f32.mrf.mxu0 }
 0x851   : > { %v1403_v28 = vadd.f32 %v1397_v27, %v1239_v26 }
 0x852   : > { %v2046_v29 = vpop.f32.mrf.mxu0 }
 0x853   : > { %v1404_v30 = vsel %vm1014_vm4, %v1403_v28, 0.0 }
 0x854   : > { %1405 = vadd.xlane.f32.xlu0 %v1404_v30  ;;  %v1400_v31 = vpop.f32.mrf.mxu0 }
 0x856   : > { %v2047_v32 = vpop.f32.mrf.mxu0 }
 0x8dd   : > { %v1406_v33 = vpop.xlane.xlu0 %1405 }
 0x8de   : > { %v1408_v34 = vmul.f32 0.03125, %v1406_v33 }
 0x8e0   : > { %v1409_v35 = vsub.f32 %v1403_v28, %v1408_v34 }
 0x8e2   : > { %v1410_v36 = vmul.f32 %v1409_v35, %v1409_v35 }
 0x8e4   : > { %v1411_v37 = vsel %vm1014_vm4, %v1410_v36, 0.0 }
 0x8e5   : > { %1412 = vadd.xlane.f32.xlu1 %v1411_v37 }
 0x96e   : > { %v1413_v41 = vpop.xlane.xlu1 %1412 }
 0x96f   : > { %v1414_v42 = vmul.f32 0.03125, %v1413_v41 }
 0x971   : > { %v1415_v43 = vadd.f32 1e-05, %v1414_v42 }
 0x973   : > { %2215 = vrsqrt.f32 %v1415_v43 }
 0x980   : > { %v2216_v44 = vpop.eup %2215 }
 0x981   : > { %v1417_v46 = vmul.f32 %v2216_v44, %v1409_v35 }
 0x983   : > { %v1425_v48 = vmul.f32 %v1944_v45, %v1417_v46 }
 0x985   : > { %v1433_v49 = vadd.f32 %v1945_v47, %v1425_v48 }
 0x987   : > { %v1434_v50 = vpack.c.bf16 %v1433_v49, %v1433_v49 }
 0x989   : > { %2053 = vmatmul.mubr.msk.bf16.vlgmr.msra.gmra.mxu1 %vm1014_vm4, %v1434_v50 }
 0xa49   : > { %v1495_v54 = vpop.f32.mrf.mxu1 }
 0xa4a   : > { %v1496_v55 = vadd.f32 %v1946_v53, %v1495_v54 }
 0xa4b   : > { %v2054_v56 = vpop.f32.mrf.mxu1 }
 0xa4c   : > { %v1501_v57 = vmax.f32 %v1496_v55, 0.0 }
 0xa4d   : > { %v1498_v58 = vpop.f32.mrf.mxu1 }
 0xa4e   : > { %v1502_v59 = vpack.c.bf16 %v1501_v57, %v1501_v57 }
 0xa4f   : > { %v2055_v60 = vpop.f32.mrf.mxu1 }
 0xa50   : > { %2065 = vmatmul.mubr.msk.bf16.vlgmr.msra.gmra.mxu0 %vm1542_vm8, %v1502_v59 }
 0xb10   : > { %v1580_v62 = vpop.f32.mrf.mxu0 }
 0xb11   : > { %v1581_v17 = vadd.f32 %v1950_v61, %v1580_v62 }
 0xb12   : > { %v2066_v63 = vpop.f32.mrf.mxu0 }
 0xb13   : > { %v1586_v0 = vadd.f32 %v1581_v17, %v1433_v49 }
 0xb14   : > { %v1583_v1 = vpop.f32.mrf.mxu0 }
 0xb15   : > { %v1587_v2 = vsel %vm1014_vm4, %v1586_v0, 0.0 }
 0xb16   : > { %1588 = vadd.xlane.f32.xlu1 %v1587_v2  ;;  %v2067_v3 = vpop.f32.mrf.mxu0 }
 0xb9f   : > { %v1589_v4 = vpop.xlane.xlu1 %1588 }
 0xba0   : > { %v1590_v5 = vmul.f32 0.03125, %v1589_v4 }
 0xba2   : > { %v1591_v6 = vsub.f32 %v1586_v0, %v1590_v5 }
 0xba4   : > { %v1592_v7 = vmul.f32 %v1591_v6, %v1591_v6 }
 0xba6   : > { %v1593_v8 = vsel %vm1014_vm4, %v1592_v7, 0.0 }
 0xba7   : > { %1594 = vadd.xlane.f32.xlu1 %v1593_v8 }
 0xc30   : > { %v1595_v9 = vpop.xlane.xlu1 %1594 }
 0xc31   : > { %v1596_v10 = vmul.f32 0.03125, %v1595_v9 }
 0xc33   : > { %v1597_v11 = vadd.f32 1e-05, %v1596_v10 }
 0xc35   : > { %2217 = vrsqrt.f32 %v1597_v11 }
 0xc42   : > { %v2218_v12 = vpop.eup %2217 }
 0xc43   : > { %v1599_v14 = vmul.f32 %v2218_v12, %v1591_v6 }
 0xc45   : > { %v1607_v16 = vmul.f32 %v1956_v13, %v1599_v14  ;;  %1620 = sbr.rel (%p1958_p1) target bundleno = 3149 (0xc4d), region = 116 }
 0xc47   : > { %v1615_v18 = vadd.f32 %v1957_v15, %v1607_v16 }
 0xc49   : > { %1616 = vst.msk [vmem:[#allocation2] sm:$0xff] %vm1014_vm4, %v1615_v18 }
 0xc4a   : > { %v1621_v20 = vpack.c.bf16 %v1615_v18, %v1615_v18  ;;  %vm1622_vm9 = vcmask 257024  }
 0xc4c   : > { %1623 = vst.msk [vmem:[%s2869_s24] sm:$0xf] %vm1622_vm9, %v1621_v20 }
 0xc4d PF: > { %s3185_s9 = sld [smem:[#allocation22_spill]]  ;;  %s1638_s22 = sshll.u32 %s2869_s24, 4  ;;  %s1639_s22 = int_to_ptr.vmem [resolvable:$true] %s1638_s22 }
 0xc4e   : > { %s3186_s3 = sld [smem:[#allocation33_spill]]  ;;  %s2331_s19 = scalar_lea.vmem %s1639_s22, 64 }
 0xc4f   : > { %s3187_s16 = sld [smem:[#allocation30_spill]]  ;;  %p2332_p7 = scmp.ne.s32.totalorder %s1639_s22, %s2331_s19 }
 0xc50   : > { %s3188_s20 = sld [smem:[#allocation52_spill]]  ;;  %s2474_s30 = smov [#allocation11]  }
 0xc51   : > { %s2335_s25 = sshll.u32 %s2474_s30, 4  ;;  %s2336_s25 = int_to_ptr.vmem [resolvable:$false] %s2335_s25 }
 0xc52   : > { %s2337_s4 = scalar_lea.vmem %s2336_s25, 128  ;;  %p2338_p3 = scmp.lt.s32.totalorder %s1639_s22, %s2336_s25 }
 0xc53   : > { %s1960_s0 = sshll.u32 %s3185_s9, 6  ;;  %p2339_p6 = scmp.lt.s32.totalorder %s2337_s4, %s2331_s19 }
 0xc54   : > { %s1625_s23 = scalar_lea.sflag [#allocation5], %s3186_s3 }
 0xc55   : > { %p3190_p12 = scmp.ne.s32.totalorder %s3187_s16, 0  ;;  %p2340_p8 = por %p2339_p6, %p2338_p3 }
 0xc56   : > { %s3189_s14 = smov %s3188_s20  ;;  %s1636_s29 = scalar_lea.hbm %s3188_s20, %s1960_s0 }
 0xc57   : > { %p2333_p11 = pnand %p2332_p7, %p3190_p12 }
 0xc59   : > { %p2334_p0 = pneg %p2333_p11 }
 0xc5b   : > { %p2341_p13 = pnand %p2340_p8, %p2334_p0 }
 0xc5d   : > { %2344 = shalt.err (!%p2341_p13)
}
 0xc5e   : > { %s2345_s5 = scalar_lea.hbm %s1636_s29, 64  ;;  %s2349_s12 = scalar_lea.hbm %s3189_s14, 128 }
 0xc5f   : > { %p2346_p4 = scmp.ne.s32.totalorder %s1636_s29, %s2345_s5  ;;  %p2350_p10 = scmp.lt.s32.totalorder %s1636_s29, %s3189_s14 }
 0xc60   : > { %p2351_p5 = scmp.lt.s32.totalorder %s2349_s12, %s2345_s5 }
 0xc61   : > { %p2347_p9 = pnand %p2346_p4, %p3190_p12 }
 0xc62   : > { %p2352_p1 = por %p2351_p5, %p2350_p10 }
 0xc63   : > { %p2348_p2 = pneg %p2347_p9 }
 0xc65   : > { %p2353_p7 = pnand %p2352_p1, %p2348_p2 }
 0xc67   : > { %2356 = shalt.err (!%p2353_p7)
}
 0xc68   : > { %2076 = dma.vmem_to_hbm [thread:$0]  (%p3190_p12), %s1639_s22, 64, %s1636_s29, %s1625_s23  }
 0xc69 PF: > { %s3191_s15 = sld [smem:[#allocation25_spill]] }
 0xc6a   : > { %s3192_s11 = sld [smem:[#allocation18_spill]] }
 0xc6b   : > { %s3193_s27 = sld [smem:[#allocation31_spill]] }
 0xc6f   : > { %p2096_p11 = scmp.ge.s32.totalorder %s3191_s15, 2 }
 0xc70   : > { %s1650_s28 = sand.u32 1, %s3192_s11  }
 0xc71   : > { %p3194_p0 = scmp.ne.s32.totalorder %s3193_s27, 0  ;;  %s1651_s6 = scalar_lea.sflag [#allocation5], %s1650_s28 }
 0xc73   : > { %p2092_p3 = pnand %p2096_p11, %p3194_p0 }
 0xc75   : > { %p2093_p6 = pneg %p2092_p3 }
 0xc77   : > { %2414 = dma.done.wait (%p2093_p6), %s1651_s6, 64  }
 0xc78   : > { %2416 = vsyncadd (%p2093_p6), %s1651_s6, 4294967232  ;;  %s40_s2 = sadd.s32 1, %s3191_s15   ;;  %s3195_s27 = sld [smem:[#allocation16_spill]] }
 0xc79   : > { %p37_p8 = scmp.ge.s32.totalorder %s40_s2, 6   ;;  %s3196_s28 = sld [smem:[#allocation17_spill]] }
 0xc7a   : > { %s3197_s29 = sld [smem:[#allocation28_spill]] }
 0xc7b   : > { %s3198_s30 = sld [smem:[#allocation19_spill]] }
 0xc7c   : > { %s3199_s0 = sld [smem:[#allocation20_spill]] }
 0xc7d   : > { %s3200_s19 = sld [smem:[#allocation32_spill]]  ;;  %39 = sbr.rel (!%p37_p8) target bundleno = 33 (0x21), region = 218 }
 0xc7e   : > { %s3201_s1 = sld [smem:[#allocation23_spill]] }
 0xc7f   : > { %s3202_s20 = sld [smem:[#allocation24_spill]] }
 0xc80   : > { %s3203_s21 = sld [smem:[#allocation26_spill]] }
 0xc81   : > { %s3204_s22 = sld [smem:[#allocation29_spill]] }
 0xc82   :  { %1656 = vsyncpa [#allocation4], 1 }
 0xc83   :  { %1658 = vsyncpa [#allocation4 + $0x1], 1 }
 0xc84   :  { %1659 = vsyncpa [#allocation7], 1 }
 0xc85   :  { %1661 = vsyncpa [#allocation7 + $0x1], 1 }
 0xc86   :  { %1662 = vsyncpa [#allocation10], 1 }
 0xc87   :  { %1664 = vsyncpa [#allocation10 + $0x1], 1 }
 0xc88   :  { %1665 = vsyncpa [#allocation5], 1 }
 0xc89   :  { %1667 = vsyncpa [#allocation5 + $0x1], 1 }

</bundles_post_ra>
